<compile_context>
chip_gen: v6e
topology: v6e:2x2x1
jax: 0.10.0
libtpu: 0.0.40
codegen_flags: <defaults>
</compile_context>

<pallas_src>
import math

import jax
import jax.numpy as jnp
from jax import lax
from jax.experimental import pallas as pl
from jax.experimental.pallas import tpu as pltpu


# ----------------------------------------------------------------------------
# helpers
# ----------------------------------------------------------------------------
def _round_up(v, m):
    return ((v + m - 1) // m) * m


def _pad2d(a, rows, cols):
    return jnp.pad(a, ((0, rows - a.shape[0]), (0, cols - a.shape[1])))


def _pad1d(a, n):
    return jnp.pad(a, (0, n - a.shape[0]))


# ----------------------------------------------------------------------------
# fused Pallas kernel
# ----------------------------------------------------------------------------
def _make_kernel(h_true):
    """Fused message passing (3 edge types) + gated update + LayerNorm."""

    def kernel(counts, src, tgt,                         # SMEM scalar prefetch
               x_ref, attrp_ref, w1s_ref, w1t_ref, w2m_ref, b2m_ref,
               wg4_ref, bg_ref, w1u4_ref, b1u_ref, w2u_ref, b2u_ref,
               gamma_ref, beta_ref, mask_ref,
               out_ref,
               sf_ref, tf_ref, msg_ref, agg_ref, gacc_ref, uacc_ref):
        et = pl.program_id(0)          # edge type: 0 local, 1 medium, 2 long
        n_e = counts[et]               # true edge count for this type

        # ---- step 0: initialize accumulators with the x-block of Wg / W1u ----
        @pl.when(et == 0)
        def _init():
            xb = x_ref[...].astype(jnp.bfloat16)
            gacc_ref[...] = (jnp.dot(xb, wg4_ref[0],
                                     preferred_element_type=jnp.float32)
                             + bg_ref[...])
            uacc_ref[...] = (jnp.dot(xb, w1u4_ref[0],
                                     preferred_element_type=jnp.float32)
                             + b1u_ref[...])

        # ---- per-edge-type scratch reset ----
        sf_ref[...] = jnp.zeros_like(sf_ref)
        tf_ref[...] = jnp.zeros_like(tf_ref)
        agg_ref[...] = jnp.zeros_like(agg_ref)

        # ---- index-based gather: sf[e] = x[src[e]], tf[e] = x[tgt[e]] ----
        def gather_body(e, carry):
            s = src[et, e]
            t = tgt[et, e]
            sf_ref[pl.ds(e, 1), :] = x_ref[pl.ds(s, 1), :]
            tf_ref[pl.ds(e, 1), :] = x_ref[pl.ds(t, 1), :]
            return carry

        lax.fori_loop(0, n_e, gather_body, 0)

        # ---- message MLP (bf16 MXU matmuls, f32 accumulation) ----
        h = (jnp.dot(sf_ref[...].astype(jnp.bfloat16), w1s_ref[...],
                     preferred_element_type=jnp.float32)
             + jnp.dot(tf_ref[...].astype(jnp.bfloat16), w1t_ref[...],
                       preferred_element_type=jnp.float32)
             + attrp_ref[...])                     # attr @ W1a + b1 (precomputed)
        h = jnp.maximum(h, 0.0)
        # TODO(synk): nn.Dropout(0.1) is identity in eval mode; training would
        # need pltpu.prng_seed / prng_random_bits masking.
        msg_ref[...] = (jnp.dot(h.astype(jnp.bfloat16), w2m_ref[...],
                                preferred_element_type=jnp.float32)
                        + b2m_ref[...])

        # ---- scatter-add messages into the per-target aggregate (VMEM) ----
        def scatter_body(e, carry):
            t = tgt[et, e]
            agg_ref[pl.ds(t, 1), :] = (agg_ref[pl.ds(t, 1), :]
                                       + msg_ref[pl.ds(e, 1), :])
            return carry

        lax.fori_loop(0, n_e, scatter_body, 0)

        # ---- fold aggregate into concat-free (row-split) update accumulators ----
        agg_bf = agg_ref[...].astype(jnp.bfloat16)
        gacc_ref[...] += jnp.dot(agg_bf, wg4_ref[et + 1],
                                 preferred_element_type=jnp.float32)
        uacc_ref[...] += jnp.dot(agg_bf, w1u4_ref[et + 1],
                                 preferred_element_type=jnp.float32)

        # ---- last step: gated residual + masked LayerNorm epilogue ----
        @pl.when(et == pl.num_programs(0) - 1)
        def _finalize():
            xf = x_ref[...]
            gate = jax.nn.sigmoid(gacc_ref[...])
            hu = jnp.maximum(uacc_ref[...], 0.0)
            upd = (jnp.dot(hu.astype(jnp.bfloat16), w2u_ref[...],
                           preferred_element_type=jnp.float32) + b2u_ref[...])
            out = gate * upd + (1.0 - gate) * xf

            mask = mask_ref[...]                  # 1.0 on real lanes, 0.0 on pad
            inv_h = 1.0 / float(h_true)
            mean = jnp.sum(out * mask, axis=-1, keepdims=True) * inv_h
            cent = (out - mean) * mask
            var = jnp.sum(cent * cent, axis=-1, keepdims=True) * inv_h
            norm = cent * lax.rsqrt(var + 1e-5)
            out_ref[...] = norm * gamma_ref[...] + beta_ref[...]

    return kernel


# ----------------------------------------------------------------------------
# wrapper
# ----------------------------------------------------------------------------
def multiscale_message_layer(x, edge_index, edge_attr, edge_slices, params):
    """Forward pass mirroring MultiscaleMessageLayer.forward (eval mode)."""
    N, H = x.shape
    Hp = _round_up(H, 128)        # lane-pad hidden dim -> full-width MXU matmuls
    Np = _round_up(N, 8)          # sublane-pad node count

    edge_types = (('local', 'local_message'),
                  ('medium', 'medium_message'),
                  ('long', 'long_message'))

    n_es = []
    for et_name, _ in edge_types:
        sl = edge_slices.get(et_name, slice(0, 0))
        n_es.append(int(sl.stop - sl.start))
    E_pad = max(8, _round_up(max(n_es + [1]), 8))

    counts_list, src_list, tgt_list, attrp_list = [], [], [], []
    w1s_list, w1t_list, w2m_list, b2m_list = [], [], [], []
    for (et_name, pname), n_e in zip(edge_types, n_es):
        sl = edge_slices.get(et_name, slice(0, 0))
        p = params[pname]
        w1 = p['w1']                                  # [2H+3, H]
        w1s_list.append(_pad2d(w1[:H], Hp, Hp))
        w1t_list.append(_pad2d(w1[H:2 * H], Hp, Hp))
        w2m_list.append(_pad2d(p['w2'], Hp, Hp))
        b2m_list.append(_pad2d(p['b2'].reshape(1, H), 1, Hp))
        if n_e > 0:
            src = edge_index[0, sl].astype(jnp.int32)
            tgt = edge_index[1, sl].astype(jnp.int32)
            attr = edge_attr[sl].astype(jnp.float32)
            attrp = attr @ w1[2 * H:] + p['b1']       # [n_e, H], K=3 off the MXU
        else:
            src = jnp.zeros((0,), jnp.int32)
            tgt = jnp.zeros((0,), jnp.int32)
            attrp = jnp.zeros((0, H), jnp.float32)
        counts_list.append(n_e)
        src_list.append(_pad1d(src, E_pad))
        tgt_list.append(_pad1d(tgt, E_pad))
        attrp_list.append(_pad2d(attrp, E_pad, Hp))

    counts = jnp.asarray(counts_list, jnp.int32)          # [3]       (SMEM)
    src_idx = jnp.stack(src_list)                          # [3,E_pad] (SMEM)
    tgt_idx = jnp.stack(tgt_list)                          # [3,E_pad] (SMEM)
    attr_proj = jnp.stack(attrp_list)                      # [3,E_pad,Hp] f32
    w1s_all = jnp.stack(w1s_list).astype(jnp.bfloat16)     # [3,Hp,Hp]
    w1t_all = jnp.stack(w1t_list).astype(jnp.bfloat16)
    w2m_all = jnp.stack(w2m_list).astype(jnp.bfloat16)
    b2m_all = jnp.stack(b2m_list)                          # [3,1,Hp] f32

    # split the [4H, H] update matrices row-wise: (x, local, medium, long)
    wg = params['update_gate']['w']
    w1u = params['update_mlp']['w1']
    wg4 = jnp.stack([_pad2d(wg[i * H:(i + 1) * H], Hp, Hp)
                     for i in range(4)]).astype(jnp.bfloat16)
    w1u4 = jnp.stack([_pad2d(w1u[i * H:(i + 1) * H], Hp, Hp)
                      for i in range(4)]).astype(jnp.bfloat16)
    bg = _pad2d(params['update_gate']['b'].reshape(1, H), 1, Hp)
    b1u = _pad2d(params['update_mlp']['b1'].reshape(1, H), 1, Hp)
    w2u = _pad2d(params['update_mlp']['w2'], Hp, Hp).astype(jnp.bfloat16)
    b2u = _pad2d(params['update_mlp']['b2'].reshape(1, H), 1, Hp)
    gamma = _pad2d(params['layer_norm']['gamma'].reshape(1, H), 1, Hp)
    beta = _pad2d(params['layer_norm']['beta'].reshape(1, H), 1, Hp)
    lane_mask = _pad2d(jnp.ones((1, H), jnp.float32), 1, Hp)

    x_pad = _pad2d(x.astype(jnp.float32), Np, Hp)

    kernel = _make_kernel(H)

    def _whole(shape):
        zeros = (0,) * len(shape)
        return pl.BlockSpec(shape, lambda et, *_: zeros)

    def _per_type(tail):
        idx = (0,) * len(tail)
        return pl.BlockSpec((None,) + tail, lambda et, *_: (et,) + idx)

    in_specs = [
        _whole((Np, Hp)),              # x (resident across the 3 steps)
        _per_type((E_pad, Hp)),        # attr_proj[et]
        _per_type((Hp, Hp)),           # w1s[et]
        _per_type((Hp, Hp)),           # w1t[et]
        _per_type((Hp, Hp)),           # w2m[et]
        _per_type((1, Hp)),            # b2m[et]
        _whole((4, Hp, Hp)),           # wg4
        _whole((1, Hp)),               # bg
        _whole((4, Hp, Hp)),           # w1u4
        _whole((1, Hp)),               # b1u
        _whole((Hp, Hp)),              # w2u
        _whole((1, Hp)),               # b2u
        _whole((1, Hp)),               # gamma
        _whole((1, Hp)),               # beta
        _whole((1, Hp)),               # lane mask
    ]

    grid_spec = pltpu.PrefetchScalarGridSpec(
        num_scalar_prefetch=3,
        grid=(3,),
        in_specs=in_specs,
        out_specs=pl.BlockSpec((Np, Hp), lambda et, *_: (0, 0)),
        scratch_shapes=[
            pltpu.VMEM((E_pad, Hp), jnp.float32),   # gathered src features
            pltpu.VMEM((E_pad, Hp), jnp.float32),   # gathered tgt features
            pltpu.VMEM((E_pad, Hp), jnp.float32),   # messages
            pltpu.VMEM((Np, Hp), jnp.float32),      # per-type aggregate
            pltpu.VMEM((Np, Hp), jnp.float32),      # gate pre-activation acc
            pltpu.VMEM((Np, Hp), jnp.float32),      # update-MLP pre-activation acc
        ],
    )

    flops = int(2 * Hp * Hp * (3 * 3 * E_pad + 3 * 2 * Np + 3 * Np))
    transcendentals = int(Np * Hp + Np)
    operands = (counts, src_idx, tgt_idx, x_pad, attr_proj, w1s_all, w1t_all,
                w2m_all, b2m_all, wg4, bg, w1u4, b1u, w2u, b2u, gamma, beta,
                lane_mask)
    bytes_accessed = int(sum(int(a.size) * a.dtype.itemsize for a in operands)
                         + Np * Hp * 4)

    out_full = pl.pallas_call(
        kernel,
        grid_spec=grid_spec,
        out_shape=jax.ShapeDtypeStruct((Np, Hp), jnp.float32),
        compiler_params=pltpu.CompilerParams(
            dimension_semantics=("arbitrary",),     # edge-type axis is a reduction
            vmem_limit_bytes=32 * 1024 * 1024),
        cost_estimate=pl.CostEstimate(
            flops=flops, transcendentals=transcendentals,
            bytes_accessed=bytes_accessed),
    )(*operands)

    return out_full[:N, :H]


# ----------------------------------------------------------------------------
# Deterministic parameter init (torch.nn.Linear-style uniform bounds)
# ----------------------------------------------------------------------------
def init_params(key, H, edge_dim=3):
    def linear(k, fin, fout):
        kw, kb = jax.random.split(k)
        bound = 1.0 / math.sqrt(fin)
        w = jax.random.uniform(kw, (fin, fout), jnp.float32, -bound, bound)
        b = jax.random.uniform(kb, (fout,), jnp.float32, -bound, bound)
        return w, b

    ks = list(jax.random.split(key, 9))
    params = {}
    i = 0
    for name in ('local_message', 'medium_message', 'long_message'):
        w1, b1 = linear(ks[i], 2 * H + edge_dim, H); i += 1
        w2, b2 = linear(ks[i], H, H); i += 1
        params[name] = dict(w1=w1, b1=b1, w2=w2, b2=b2)
    wg, bg = linear(ks[i], 4 * H, H); i += 1
    params['update_gate'] = dict(w=wg, b=bg)
    w1, b1 = linear(ks[i], 4 * H, H); i += 1
    w2, b2 = linear(ks[i], H, H); i += 1
    params['update_mlp'] = dict(w1=w1, b1=b1, w2=w2, b2=b2)
    params['layer_norm'] = dict(gamma=jnp.ones((H,), jnp.float32),
                                beta=jnp.zeros((H,), jnp.float32))
    return params


# ----------------------------------------------------------------------------
# Pure-JAX reference (mirrors the PyTorch forward, eval mode)
# ----------------------------------------------------------------------------
def reference_forward(x, edge_index, edge_attr, edge_slices, params):
    N, H = x.shape
    aggs = {}
    for et, pname in (('local', 'local_message'),
                      ('medium', 'medium_message'),
                      ('long', 'long_message')):
        sl = edge_slices.get(et, slice(0, 0))
        agg = jnp.zeros((N, H), x.dtype)
        if sl.stop - sl.start > 0:
            src = edge_index[0, sl]
            tgt = edge_index[1, sl]
            attrs = edge_attr[sl]
            p = params[pname]
            mi = jnp.concatenate([x[src], x[tgt], attrs], axis=-1)
            h = jnp.maximum(mi @ p['w1'] + p['b1'], 0.0)
            msg = h @ p['w2'] + p['b2']
            agg = agg.at[tgt].add(msg)
        aggs[et] = agg
    u = jnp.concatenate([x, aggs['local'], aggs['medium'], aggs['long']], axis=-1)
    g = jax.nn.sigmoid(u @ params['update_gate']['w'] + params['update_gate']['b'])
    upd = (jnp.maximum(u @ params['update_mlp']['w1'] + params['update_mlp']['b1'], 0.0)
           @ params['update_mlp']['w2'] + params['update_mlp']['b2'])
    out = g * upd + (1.0 - g) * x
    mean = out.mean(-1, keepdims=True)
    var = ((out - mean) ** 2).mean(-1, keepdims=True)
    return ((out - mean) / jnp.sqrt(var + 1e-5)
            * params['layer_norm']['gamma'] + params['layer_norm']['beta'])


# ----------------------------------------------------------------------------
if __name__ == "__main__":
    key = jax.random.PRNGKey(0)
    N, H, EDGE_DIM = 64, 32, 3
    kx, ke, ka, kp = jax.random.split(key, 4)

    x = jax.random.normal(kx, (N, H), jnp.float32)

    n_local, n_medium, n_long = 48, 32, 16
    e_total = n_local + n_medium + n_long
    edge_index = jax.random.randint(ke, (2, e_total), 0, N, jnp.int32)
    edge_attr = jax.random.normal(ka, (e_total, EDGE_DIM), jnp.float32)
    edge_slices = {'local': slice(0, n_local),
                   'medium': slice(n_local, n_local + n_medium),
                   'long': slice(n_local + n_medium, e_total)}

    params = init_params(kp, H, EDGE_DIM)

    out = multiscale_message_layer(x, edge_index, edge_attr, edge_slices, params)
    out = jax.block_until_ready(out)

    ref = reference_forward(x, edge_index, edge_attr, edge_slices, params)
    assert out.shape == (N, H)
    assert bool(jnp.allclose(out, ref, atol=5e-2, rtol=5e-2)), "mismatch vs reference"

    print("KERNEL_OK")
</pallas_src>

<mosaic_0001>
module attributes {stable_mosaic.version = 11 : i64} {
  func.func @kernel(%arg0: i32, %arg1: memref<3xi32, #tpu.memory_space<smem>>, %arg2: memref<3x48xi32, #tpu.memory_space<smem>>, %arg3: memref<3x48xi32, #tpu.memory_space<smem>>, %arg4: memref<64x128xf32, #tpu.memory_space<vmem>>, %arg5: memref<1x48x128xf32, #tpu.memory_space<vmem>>, %arg6: memref<1x128x128xbf16, #tpu.memory_space<vmem>>, %arg7: memref<1x128x128xbf16, #tpu.memory_space<vmem>>, %arg8: memref<1x128x128xbf16, #tpu.memory_space<vmem>>, %arg9: memref<1x1x128xf32, #tpu.memory_space<vmem>>, %arg10: memref<4x128x128xbf16, #tpu.memory_space<vmem>>, %arg11: memref<1x128xf32, #tpu.memory_space<vmem>>, %arg12: memref<4x128x128xbf16, #tpu.memory_space<vmem>>, %arg13: memref<1x128xf32, #tpu.memory_space<vmem>>, %arg14: memref<128x128xbf16, #tpu.memory_space<vmem>>, %arg15: memref<1x128xf32, #tpu.memory_space<vmem>>, %arg16: memref<1x128xf32, #tpu.memory_space<vmem>>, %arg17: memref<1x128xf32, #tpu.memory_space<vmem>>, %arg18: memref<1x128xf32, #tpu.memory_space<vmem>>, %arg19: memref<64x128xf32, #tpu.memory_space<vmem>>, %arg20: memref<48x128xf32, #tpu.memory_space<vmem>>, %arg21: memref<48x128xf32, #tpu.memory_space<vmem>>, %arg22: memref<48x128xf32, #tpu.memory_space<vmem>>, %arg23: memref<64x128xf32, #tpu.memory_space<vmem>>, %arg24: memref<64x128xf32, #tpu.memory_space<vmem>>, %arg25: memref<64x128xf32, #tpu.memory_space<vmem>>) attributes {dimension_semantics = [#tpu.dimension_semantics<arbitrary>], iteration_bounds = array<i64: 3>, scalar_prefetch = 3 : i64, scratch_operands = 6 : i64, tpu.core_type = #tpu.core_type<tc>, window_params = [{pipeline_mode = #tpu.pipeline_mode<synchronous>, transform_indices = @transform_0, window_bounds = array<i64: 64, 128>}, {transform_indices = @transform_1, window_bounds = array<i64: 1, 48, 128>}, {transform_indices = @transform_2, window_bounds = array<i64: 1, 128, 128>}, {transform_indices = @transform_3, window_bounds = array<i64: 1, 128, 128>}, {transform_indices = @transform_4, window_bounds = array<i64: 1, 128, 128>}, {transform_indices = @transform_5, window_bounds = array<i64: 1, 1, 128>}, {pipeline_mode = #tpu.pipeline_mode<synchronous>, transform_indices = @transform_6, window_bounds = array<i64: 4, 128, 128>}, {pipeline_mode = #tpu.pipeline_mode<synchronous>, transform_indices = @transform_7, window_bounds = array<i64: 1, 128>}, {pipeline_mode = #tpu.pipeline_mode<synchronous>, transform_indices = @transform_8, window_bounds = array<i64: 4, 128, 128>}, {pipeline_mode = #tpu.pipeline_mode<synchronous>, transform_indices = @transform_9, window_bounds = array<i64: 1, 128>}, {pipeline_mode = #tpu.pipeline_mode<synchronous>, transform_indices = @transform_10, window_bounds = array<i64: 128, 128>}, {pipeline_mode = #tpu.pipeline_mode<synchronous>, transform_indices = @transform_11, window_bounds = array<i64: 1, 128>}, {pipeline_mode = #tpu.pipeline_mode<synchronous>, transform_indices = @transform_12, window_bounds = array<i64: 1, 128>}, {pipeline_mode = #tpu.pipeline_mode<synchronous>, transform_indices = @transform_13, window_bounds = array<i64: 1, 128>}, {pipeline_mode = #tpu.pipeline_mode<synchronous>, transform_indices = @transform_14, window_bounds = array<i64: 1, 128>}, {pipeline_mode = #tpu.pipeline_mode<synchronous>, transform_indices = @transform_15, window_bounds = array<i64: 64, 128>}]} {
    %0 = arith.index_cast %arg0 : i32 to index
    %1 = memref.load %arg1[%0] : memref<3xi32, #tpu.memory_space<smem>>
    %c0_i32 = arith.constant 0 : i32
    %2 = arith.cmpi eq, %arg0, %c0_i32 : i32
    %3 = arith.extui %2 : i1 to i32
    %c0_i32_0 = arith.constant 0 : i32
    %4 = arith.cmpi ne, %3, %c0_i32_0 : i32
    scf.if %4 {
      %c0_57 = arith.constant 0 : index
      %c0_58 = arith.constant 0 : index
      %61 = vector.load %arg4[%c0_57, %c0_58] : memref<64x128xf32, #tpu.memory_space<vmem>>, vector<64x128xf32>
      %62 = arith.truncf %61 : vector<64x128xf32> to vector<64x128xbf16>
      %c0_59 = arith.constant 0 : index
      %c0_60 = arith.constant 0 : index
      %c0_61 = arith.constant 0 : index
      %63 = vector.load %arg10[%c0_59, %c0_60, %c0_61] : memref<4x128x128xbf16, #tpu.memory_space<vmem>>, vector<1x128x128xbf16>
      %64 = vector.shape_cast %63 : vector<1x128x128xbf16> to vector<128x128xbf16>
      %cst_62 = arith.constant dense<0.000000e+00> : vector<64x128xf32>
      %65 = tpu.matmul %62, %64, %cst_62 {dimension_numbers = #tpu.dot_dimension_numbers<[1], [0], [0], [1], [0, 0, 1, 1], [], []>} : vector<64x128xbf16>, vector<128x128xbf16>, vector<64x128xf32> -> vector<64x128xf32>
      %c0_63 = arith.constant 0 : index
      %c0_64 = arith.constant 0 : index
      %66 = vector.load %arg11[%c0_63, %c0_64] : memref<1x128xf32, #tpu.memory_space<vmem>>, vector<1x128xf32>
      %67 = vector.broadcast %66 : vector<1x128xf32> to vector<64x128xf32>
      %68 = arith.addf %65, %67 : vector<64x128xf32>
      %c0_65 = arith.constant 0 : index
      %c0_66 = arith.constant 0 : index
      %69 = vector.load %arg24[%c0_65, %c0_66] : memref<64x128xf32, #tpu.memory_space<vmem>>, vector<64x128xf32>
      tpu.vector_store %arg24[%c0_65, %c0_66], %68 {strides = array<i32>} : memref<64x128xf32, #tpu.memory_space<vmem>>, vector<64x128xf32>,
      %c0_67 = arith.constant 0 : index
      %c0_68 = arith.constant 0 : index
      %c0_69 = arith.constant 0 : index
      %70 = vector.load %arg12[%c0_67, %c0_68, %c0_69] : memref<4x128x128xbf16, #tpu.memory_space<vmem>>, vector<1x128x128xbf16>
      %71 = vector.shape_cast %70 : vector<1x128x128xbf16> to vector<128x128xbf16>
      %cst_70 = arith.constant dense<0.000000e+00> : vector<64x128xf32>
      %72 = tpu.matmul %62, %71, %cst_70 {dimension_numbers = #tpu.dot_dimension_numbers<[1], [0], [0], [1], [0, 0, 1, 1], [], []>} : vector<64x128xbf16>, vector<128x128xbf16>, vector<64x128xf32> -> vector<64x128xf32>
      %c0_71 = arith.constant 0 : index
      %c0_72 = arith.constant 0 : index
      %73 = vector.load %arg13[%c0_71, %c0_72] : memref<1x128xf32, #tpu.memory_space<vmem>>, vector<1x128xf32>
      %74 = vector.broadcast %73 : vector<1x128xf32> to vector<64x128xf32>
      %75 = arith.addf %72, %74 : vector<64x128xf32>
      %c0_73 = arith.constant 0 : index
      %c0_74 = arith.constant 0 : index
      %76 = vector.load %arg25[%c0_73, %c0_74] : memref<64x128xf32, #tpu.memory_space<vmem>>, vector<64x128xf32>
      tpu.vector_store %arg25[%c0_73, %c0_74], %75 {strides = array<i32>} : memref<64x128xf32, #tpu.memory_space<vmem>>, vector<64x128xf32>,
    } else {
    }
    %cst = arith.constant 0.000000e+00 : f32
    %5 = vector.broadcast %cst : f32 to vector<48x128xf32>
    %c0 = arith.constant 0 : index
    %c0_1 = arith.constant 0 : index
    %6 = vector.load %arg20[%c0, %c0_1] : memref<48x128xf32, #tpu.memory_space<vmem>>, vector<48x128xf32>
    tpu.vector_store %arg20[%c0, %c0_1], %5 {strides = array<i32>} : memref<48x128xf32, #tpu.memory_space<vmem>>, vector<48x128xf32>,
    %cst_2 = arith.constant 0.000000e+00 : f32
    %7 = vector.broadcast %cst_2 : f32 to vector<48x128xf32>
    %c0_3 = arith.constant 0 : index
    %c0_4 = arith.constant 0 : index
    %8 = vector.load %arg21[%c0_3, %c0_4] : memref<48x128xf32, #tpu.memory_space<vmem>>, vector<48x128xf32>
    tpu.vector_store %arg21[%c0_3, %c0_4], %7 {strides = array<i32>} : memref<48x128xf32, #tpu.memory_space<vmem>>, vector<48x128xf32>,
    %cst_5 = arith.constant 0.000000e+00 : f32
    %9 = vector.broadcast %cst_5 : f32 to vector<64x128xf32>
    %c0_6 = arith.constant 0 : index
    %c0_7 = arith.constant 0 : index
    %10 = vector.load %arg23[%c0_6, %c0_7] : memref<64x128xf32, #tpu.memory_space<vmem>>, vector<64x128xf32>
    tpu.vector_store %arg23[%c0_6, %c0_7], %9 {strides = array<i32>} : memref<64x128xf32, #tpu.memory_space<vmem>>, vector<64x128xf32>,
    %c0_i32_8 = arith.constant 0 : i32
    %c0_i32_9 = arith.constant 0 : i32
    %11 = arith.subi %1, %c0_i32_9 : i32
    %12 = arith.addi %c0_i32_9, %11 : i32
    %c1_i32 = arith.constant 1 : i32
    scf.for %arg26 = %c0_i32_9 to %12 step %c1_i32  : i32 {
      %61 = arith.index_cast %arg0 : i32 to index
      %62 = arith.index_cast %arg26 : i32 to index
      %63 = memref.load %arg2[%61, %62] : memref<3x48xi32, #tpu.memory_space<smem>>
      %64 = arith.index_cast %arg0 : i32 to index
      %65 = arith.index_cast %arg26 : i32 to index
      %66 = memref.load %arg3[%64, %65] : memref<3x48xi32, #tpu.memory_space<smem>>
      %67 = arith.index_cast %63 : i32 to index
      %c0_57 = arith.constant 0 : index
      %68 = vector.load %arg4[%67, %c0_57] : memref<64x128xf32, #tpu.memory_space<vmem>>, vector<1x128xf32>
      %69 = arith.index_cast %arg26 : i32 to index
      %c0_58 = arith.constant 0 : index
      %70 = vector.load %arg20[%69, %c0_58] : memref<48x128xf32, #tpu.memory_space<vmem>>, vector<1x128xf32>
      tpu.vector_store %arg20[%69, %c0_58], %68 {strides = array<i32>} : memref<48x128xf32, #tpu.memory_space<vmem>>, vector<1x128xf32>,
      %71 = arith.index_cast %66 : i32 to index
      %c0_59 = arith.constant 0 : index
      %72 = vector.load %arg4[%71, %c0_59] : memref<64x128xf32, #tpu.memory_space<vmem>>, vector<1x128xf32>
      %73 = arith.index_cast %arg26 : i32 to index
      %c0_60 = arith.constant 0 : index
      %74 = vector.load %arg21[%73, %c0_60] : memref<48x128xf32, #tpu.memory_space<vmem>>, vector<1x128xf32>
      tpu.vector_store %arg21[%73, %c0_60], %72 {strides = array<i32>} : memref<48x128xf32, #tpu.memory_space<vmem>>, vector<1x128xf32>,
    }
    %c0_10 = arith.constant 0 : index
    %c0_11 = arith.constant 0 : index
    %13 = vector.load %arg20[%c0_10, %c0_11] : memref<48x128xf32, #tpu.memory_space<vmem>>, vector<48x128xf32>
    %14 = arith.truncf %13 : vector<48x128xf32> to vector<48x128xbf16>
    %c0_12 = arith.constant 0 : index
    %c0_13 = arith.constant 0 : index
    %c0_14 = arith.constant 0 : index
    %15 = vector.load %arg6[%c0_12, %c0_13, %c0_14] : memref<1x128x128xbf16, #tpu.memory_space<vmem>>, vector<1x128x128xbf16>
    %16 = vector.shape_cast %15 : vector<1x128x128xbf16> to vector<128x128xbf16>
    %cst_15 = arith.constant dense<0.000000e+00> : vector<48x128xf32>
    %17 = tpu.matmul %14, %16, %cst_15 {dimension_numbers = #tpu.dot_dimension_numbers<[1], [0], [0], [1], [0, 0, 1, 1], [], []>} : vector<48x128xbf16>, vector<128x128xbf16>, vector<48x128xf32> -> vector<48x128xf32>
    %c0_16 = arith.constant 0 : index
    %c0_17 = arith.constant 0 : index
    %18 = vector.load %arg21[%c0_16, %c0_17] : memref<48x128xf32, #tpu.memory_space<vmem>>, vector<48x128xf32>
    %19 = arith.truncf %18 : vector<48x128xf32> to vector<48x128xbf16>
    %c0_18 = arith.constant 0 : index
    %c0_19 = arith.constant 0 : index
    %c0_20 = arith.constant 0 : index
    %20 = vector.load %arg7[%c0_18, %c0_19, %c0_20] : memref<1x128x128xbf16, #tpu.memory_space<vmem>>, vector<1x128x128xbf16>
    %21 = vector.shape_cast %20 : vector<1x128x128xbf16> to vector<128x128xbf16>
    %cst_21 = arith.constant dense<0.000000e+00> : vector<48x128xf32>
    %22 = tpu.matmul %19, %21, %cst_21 {dimension_numbers = #tpu.dot_dimension_numbers<[1], [0], [0], [1], [0, 0, 1, 1], [], []>} : vector<48x128xbf16>, vector<128x128xbf16>, vector<48x128xf32> -> vector<48x128xf32>
    %23 = arith.addf %17, %22 : vector<48x128xf32>
    %c0_22 = arith.constant 0 : index
    %c0_23 = arith.constant 0 : index
    %c0_24 = arith.constant 0 : index
    %24 = vector.load %arg5[%c0_22, %c0_23, %c0_24] : memref<1x48x128xf32, #tpu.memory_space<vmem>>, vector<1x48x128xf32>
    %25 = vector.shape_cast %24 : vector<1x48x128xf32> to vector<48x128xf32>
    %26 = arith.addf %23, %25 : vector<48x128xf32>
    %cst_25 = arith.constant 0.000000e+00 : f32
    %27 = vector.broadcast %cst_25 : f32 to vector<48x128xf32>
    %28 = arith.maximumf %26, %27 : vector<48x128xf32>
    %29 = arith.truncf %28 : vector<48x128xf32> to vector<48x128xbf16>
    %c0_26 = arith.constant 0 : index
    %c0_27 = arith.constant 0 : index
    %c0_28 = arith.constant 0 : index
    %30 = vector.load %arg8[%c0_26, %c0_27, %c0_28] : memref<1x128x128xbf16, #tpu.memory_space<vmem>>, vector<1x128x128xbf16>
    %31 = vector.shape_cast %30 : vector<1x128x128xbf16> to vector<128x128xbf16>
    %cst_29 = arith.constant dense<0.000000e+00> : vector<48x128xf32>
    %32 = tpu.matmul %29, %31, %cst_29 {dimension_numbers = #tpu.dot_dimension_numbers<[1], [0], [0], [1], [0, 0, 1, 1], [], []>} : vector<48x128xbf16>, vector<128x128xbf16>, vector<48x128xf32> -> vector<48x128xf32>
    %c0_30 = arith.constant 0 : index
    %c0_31 = arith.constant 0 : index
    %c0_32 = arith.constant 0 : index
    %33 = vector.load %arg9[%c0_30, %c0_31, %c0_32] : memref<1x1x128xf32, #tpu.memory_space<vmem>>, vector<1x1x128xf32>
    %34 = vector.shape_cast %33 : vector<1x1x128xf32> to vector<1x128xf32>
    %35 = vector.broadcast %34 : vector<1x128xf32> to vector<48x128xf32>
    %36 = arith.addf %32, %35 : vector<48x128xf32>
    %c0_33 = arith.constant 0 : index
    %c0_34 = arith.constant 0 : index
    %37 = vector.load %arg22[%c0_33, %c0_34] : memref<48x128xf32, #tpu.memory_space<vmem>>, vector<48x128xf32>
    tpu.vector_store %arg22[%c0_33, %c0_34], %36 {strides = array<i32>} : memref<48x128xf32, #tpu.memory_space<vmem>>, vector<48x128xf32>,
    %c0_i32_35 = arith.constant 0 : i32
    %c0_i32_36 = arith.constant 0 : i32
    %38 = arith.subi %1, %c0_i32_36 : i32
    %39 = arith.addi %c0_i32_36, %38 : i32
    %c1_i32_37 = arith.constant 1 : i32
    scf.for %arg26 = %c0_i32_36 to %39 step %c1_i32_37  : i32 {
      %61 = arith.index_cast %arg0 : i32 to index
      %62 = arith.index_cast %arg26 : i32 to index
      %63 = memref.load %arg3[%61, %62] : memref<3x48xi32, #tpu.memory_space<smem>>
      %64 = arith.index_cast %63 : i32 to index
      %c0_57 = arith.constant 0 : index
      %65 = vector.load %arg23[%64, %c0_57] : memref<64x128xf32, #tpu.memory_space<vmem>>, vector<1x128xf32>
      %66 = arith.index_cast %arg26 : i32 to index
      %c0_58 = arith.constant 0 : index
      %67 = vector.load %arg22[%66, %c0_58] : memref<48x128xf32, #tpu.memory_space<vmem>>, vector<1x128xf32>
      %68 = arith.addf %65, %67 : vector<1x128xf32>
      %69 = arith.index_cast %63 : i32 to index
      %c0_59 = arith.constant 0 : index
      %70 = vector.load %arg23[%69, %c0_59] : memref<64x128xf32, #tpu.memory_space<vmem>>, vector<1x128xf32>
      tpu.vector_store %arg23[%69, %c0_59], %68 {strides = array<i32>} : memref<64x128xf32, #tpu.memory_space<vmem>>, vector<1x128xf32>,
    }
    %c0_38 = arith.constant 0 : index
    %c0_39 = arith.constant 0 : index
    %40 = vector.load %arg23[%c0_38, %c0_39] : memref<64x128xf32, #tpu.memory_space<vmem>>, vector<64x128xf32>
    %41 = arith.truncf %40 : vector<64x128xf32> to vector<64x128xbf16>
    %c0_40 = arith.constant 0 : index
    %c0_41 = arith.constant 0 : index
    %42 = vector.load %arg24[%c0_40, %c0_41] : memref<64x128xf32, #tpu.memory_space<vmem>>, vector<64x128xf32>
    %c1_i32_42 = arith.constant 1 : i32
    %43 = arith.addi %arg0, %c1_i32_42 : i32
    %44 = arith.index_cast %43 : i32 to index
    %c0_43 = arith.constant 0 : index
    %c0_44 = arith.constant 0 : index
    %45 = vector.load %arg10[%44, %c0_43, %c0_44] : memref<4x128x128xbf16, #tpu.memory_space<vmem>>, vector<1x128x128xbf16>
    %46 = vector.shape_cast %45 : vector<1x128x128xbf16> to vector<128x128xbf16>
    %cst_45 = arith.constant dense<0.000000e+00> : vector<64x128xf32>
    %47 = tpu.matmul %41, %46, %cst_45 {dimension_numbers = #tpu.dot_dimension_numbers<[1], [0], [0], [1], [0, 0, 1, 1], [], []>} : vector<64x128xbf16>, vector<128x128xbf16>, vector<64x128xf32> -> vector<64x128xf32>
    %48 = arith.addf %42, %47 : vector<64x128xf32>
    %c0_46 = arith.constant 0 : index
    %c0_47 = arith.constant 0 : index
    %49 = vector.load %arg24[%c0_46, %c0_47] : memref<64x128xf32, #tpu.memory_space<vmem>>, vector<64x128xf32>
    tpu.vector_store %arg24[%c0_46, %c0_47], %48 {strides = array<i32>} : memref<64x128xf32, #tpu.memory_space<vmem>>, vector<64x128xf32>,
    %c0_48 = arith.constant 0 : index
    %c0_49 = arith.constant 0 : index
    %50 = vector.load %arg25[%c0_48, %c0_49] : memref<64x128xf32, #tpu.memory_space<vmem>>, vector<64x128xf32>
    %c1_i32_50 = arith.constant 1 : i32
    %51 = arith.addi %arg0, %c1_i32_50 : i32
    %52 = arith.index_cast %51 : i32 to index
    %c0_51 = arith.constant 0 : index
    %c0_52 = arith.constant 0 : index
    %53 = vector.load %arg12[%52, %c0_51, %c0_52] : memref<4x128x128xbf16, #tpu.memory_space<vmem>>, vector<1x128x128xbf16>
    %54 = vector.shape_cast %53 : vector<1x128x128xbf16> to vector<128x128xbf16>
    %cst_53 = arith.constant dense<0.000000e+00> : vector<64x128xf32>
    %55 = tpu.matmul %41, %54, %cst_53 {dimension_numbers = #tpu.dot_dimension_numbers<[1], [0], [0], [1], [0, 0, 1, 1], [], []>} : vector<64x128xbf16>, vector<128x128xbf16>, vector<64x128xf32> -> vector<64x128xf32>
    %56 = arith.addf %50, %55 : vector<64x128xf32>
    %c0_54 = arith.constant 0 : index
    %c0_55 = arith.constant 0 : index
    %57 = vector.load %arg25[%c0_54, %c0_55] : memref<64x128xf32, #tpu.memory_space<vmem>>, vector<64x128xf32>
    tpu.vector_store %arg25[%c0_54, %c0_55], %56 {strides = array<i32>} : memref<64x128xf32, #tpu.memory_space<vmem>>, vector<64x128xf32>,
    %c2_i32 = arith.constant 2 : i32
    %58 = arith.cmpi eq, %arg0, %c2_i32 : i32
    %59 = arith.extui %58 : i1 to i32
    %c0_i32_56 = arith.constant 0 : i32
    %60 = arith.cmpi ne, %59, %c0_i32_56 : i32
    scf.if %60 {
      %c0_57 = arith.constant 0 : index
      %c0_58 = arith.constant 0 : index
      %61 = vector.load %arg4[%c0_57, %c0_58] : memref<64x128xf32, #tpu.memory_space<vmem>>, vector<64x128xf32>
      %c0_59 = arith.constant 0 : index
      %c0_60 = arith.constant 0 : index
      %62 = vector.load %arg24[%c0_59, %c0_60] : memref<64x128xf32, #tpu.memory_space<vmem>>, vector<64x128xf32>
      %63 = arith.negf %62 : vector<64x128xf32>
      %64 = math.exp %63 : vector<64x128xf32>
      %cst_61 = arith.constant 1.000000e+00 : f32
      %65 = vector.broadcast %cst_61 : f32 to vector<64x128xf32>
      %66 = arith.addf %65, %64 : vector<64x128xf32>
      %67 = arith.divf %65, %66 : vector<64x128xf32>
      %c0_62 = arith.constant 0 : index
      %c0_63 = arith.constant 0 : index
      %68 = vector.load %arg25[%c0_62, %c0_63] : memref<64x128xf32, #tpu.memory_space<vmem>>, vector<64x128xf32>
      %cst_64 = arith.constant 0.000000e+00 : f32
      %69 = vector.broadcast %cst_64 : f32 to vector<64x128xf32>
      %70 = arith.maximumf %68, %69 : vector<64x128xf32>
      %71 = arith.truncf %70 : vector<64x128xf32> to vector<64x128xbf16>
      %c0_65 = arith.constant 0 : index
      %c0_66 = arith.constant 0 : index
      %72 = vector.load %arg14[%c0_65, %c0_66] : memref<128x128xbf16, #tpu.memory_space<vmem>>, vector<128x128xbf16>
      %cst_67 = arith.constant dense<0.000000e+00> : vector<64x128xf32>
      %73 = tpu.matmul %71, %72, %cst_67 {dimension_numbers = #tpu.dot_dimension_numbers<[1], [0], [0], [1], [0, 0, 1, 1], [], []>} : vector<64x128xbf16>, vector<128x128xbf16>, vector<64x128xf32> -> vector<64x128xf32>
      %c0_68 = arith.constant 0 : index
      %c0_69 = arith.constant 0 : index
      %74 = vector.load %arg15[%c0_68, %c0_69] : memref<1x128xf32, #tpu.memory_space<vmem>>, vector<1x128xf32>
      %75 = vector.broadcast %74 : vector<1x128xf32> to vector<64x128xf32>
      %76 = arith.addf %73, %75 : vector<64x128xf32>
      %77 = arith.mulf %67, %76 : vector<64x128xf32>
      %cst_70 = arith.constant 1.000000e+00 : f32
      %78 = vector.broadcast %cst_70 : f32 to vector<64x128xf32>
      %79 = arith.subf %78, %67 : vector<64x128xf32>
      %80 = arith.mulf %79, %61 : vector<64x128xf32>
      %81 = arith.addf %77, %80 : vector<64x128xf32>
      %c0_71 = arith.constant 0 : index
      %c0_72 = arith.constant 0 : index
      %82 = vector.load %arg18[%c0_71, %c0_72] : memref<1x128xf32, #tpu.memory_space<vmem>>, vector<1x128xf32>
      %83 = vector.broadcast %82 : vector<1x128xf32> to vector<64x128xf32>
      %84 = arith.mulf %81, %83 : vector<64x128xf32>
      %cst_73 = arith.constant dense<0.000000e+00> : vector<64xf32>
      %85 = vector.multi_reduction <add>, %84, %cst_73 [1] : vector<64x128xf32> to vector<64xf32>
      %86 = vector.shape_cast %85 : vector<64xf32> to vector<64x1xf32>
      %cst_74 = arith.constant 3.125000e-02 : f32
      %87 = vector.broadcast %cst_74 : f32 to vector<64x1xf32>
      %88 = arith.mulf %86, %87 : vector<64x1xf32>
      %89 = vector.broadcast %88 : vector<64x1xf32> to vector<64x128xf32>
      %90 = arith.subf %81, %89 : vector<64x128xf32>
      %91 = vector.broadcast %82 : vector<1x128xf32> to vector<64x128xf32>
      %92 = arith.mulf %90, %91 : vector<64x128xf32>
      %93 = arith.mulf %92, %92 : vector<64x128xf32>
      %cst_75 = arith.constant dense<0.000000e+00> : vector<64xf32>
      %94 = vector.multi_reduction <add>, %93, %cst_75 [1] : vector<64x128xf32> to vector<64xf32>
      %95 = vector.shape_cast %94 : vector<64xf32> to vector<64x1xf32>
      %cst_76 = arith.constant 3.125000e-02 : f32
      %96 = vector.broadcast %cst_76 : f32 to vector<64x1xf32>
      %97 = arith.mulf %95, %96 : vector<64x1xf32>
      %cst_77 = arith.constant 9.99999974E-6 : f32
      %98 = vector.broadcast %cst_77 : f32 to vector<64x1xf32>
      %99 = arith.addf %97, %98 : vector<64x1xf32>
      %100 = math.rsqrt %99 : vector<64x1xf32>
      %101 = vector.broadcast %100 : vector<64x1xf32> to vector<64x128xf32>
      %102 = arith.mulf %92, %101 : vector<64x128xf32>
      %c0_78 = arith.constant 0 : index
      %c0_79 = arith.constant 0 : index
      %103 = vector.load %arg16[%c0_78, %c0_79] : memref<1x128xf32, #tpu.memory_space<vmem>>, vector<1x128xf32>
      %104 = vector.broadcast %103 : vector<1x128xf32> to vector<64x128xf32>
      %105 = arith.mulf %102, %104 : vector<64x128xf32>
      %c0_80 = arith.constant 0 : index
      %c0_81 = arith.constant 0 : index
      %106 = vector.load %arg17[%c0_80, %c0_81] : memref<1x128xf32, #tpu.memory_space<vmem>>, vector<1x128xf32>
      %107 = vector.broadcast %106 : vector<1x128xf32> to vector<64x128xf32>
      %108 = arith.addf %105, %107 : vector<64x128xf32>
      %c0_82 = arith.constant 0 : index
      %c0_83 = arith.constant 0 : index
      %109 = vector.load %arg19[%c0_82, %c0_83] : memref<64x128xf32, #tpu.memory_space<vmem>>, vector<64x128xf32>
      tpu.vector_store %arg19[%c0_82, %c0_83], %108 {strides = array<i32>} : memref<64x128xf32, #tpu.memory_space<vmem>>, vector<64x128xf32>,
    } else {
    }
    return
  }
  func.func @transform_0(%arg0: i32, %arg1: memref<3xi32, #tpu.memory_space<smem>>, %arg2: memref<3x48xi32, #tpu.memory_space<smem>>, %arg3: memref<3x48xi32, #tpu.memory_space<smem>>) -> (i32, i32) {
    %c0_i32 = arith.constant 0 : i32
    %c0_i32_0 = arith.constant 0 : i32
    %c0_i32_1 = arith.constant 0 : i32
    return %c0_i32, %c0_i32_0 : i32, i32
  }
  func.func @transform_1(%arg0: i32, %arg1: memref<3xi32, #tpu.memory_space<smem>>, %arg2: memref<3x48xi32, #tpu.memory_space<smem>>, %arg3: memref<3x48xi32, #tpu.memory_space<smem>>) -> (i32, i32, i32) {
    %c0_i32 = arith.constant 0 : i32
    %c0_i32_0 = arith.constant 0 : i32
    %c0_i32_1 = arith.constant 0 : i32
    return %arg0, %c0_i32, %c0_i32_0 : i32, i32, i32
  }
  func.func @transform_2(%arg0: i32, %arg1: memref<3xi32, #tpu.memory_space<smem>>, %arg2: memref<3x48xi32, #tpu.memory_space<smem>>, %arg3: memref<3x48xi32, #tpu.memory_space<smem>>) -> (i32, i32, i32) {
    %c0_i32 = arith.constant 0 : i32
    %c0_i32_0 = arith.constant 0 : i32
    %c0_i32_1 = arith.constant 0 : i32
    return %arg0, %c0_i32, %c0_i32_0 : i32, i32, i32
  }
  func.func @transform_3(%arg0: i32, %arg1: memref<3xi32, #tpu.memory_space<smem>>, %arg2: memref<3x48xi32, #tpu.memory_space<smem>>, %arg3: memref<3x48xi32, #tpu.memory_space<smem>>) -> (i32, i32, i32) {
    %c0_i32 = arith.constant 0 : i32
    %c0_i32_0 = arith.constant 0 : i32
    %c0_i32_1 = arith.constant 0 : i32
    return %arg0, %c0_i32, %c0_i32_0 : i32, i32, i32
  }
  func.func @transform_4(%arg0: i32, %arg1: memref<3xi32, #tpu.memory_space<smem>>, %arg2: memref<3x48xi32, #tpu.memory_space<smem>>, %arg3: memref<3x48xi32, #tpu.memory_space<smem>>) -> (i32, i32, i32) {
    %c0_i32 = arith.constant 0 : i32
    %c0_i32_0 = arith.constant 0 : i32
    %c0_i32_1 = arith.constant 0 : i32
    return %arg0, %c0_i32, %c0_i32_0 : i32, i32, i32
  }
  func.func @transform_5(%arg0: i32, %arg1: memref<3xi32, #tpu.memory_space<smem>>, %arg2: memref<3x48xi32, #tpu.memory_space<smem>>, %arg3: memref<3x48xi32, #tpu.memory_space<smem>>) -> (i32, i32, i32) {
    %c0_i32 = arith.constant 0 : i32
    %c0_i32_0 = arith.constant 0 : i32
    %c0_i32_1 = arith.constant 0 : i32
    return %arg0, %c0_i32, %c0_i32_0 : i32, i32, i32
  }
  func.func @transform_6(%arg0: i32, %arg1: memref<3xi32, #tpu.memory_space<smem>>, %arg2: memref<3x48xi32, #tpu.memory_space<smem>>, %arg3: memref<3x48xi32, #tpu.memory_space<smem>>) -> (i32, i32, i32) {
    %c0_i32 = arith.constant 0 : i32
    %c0_i32_0 = arith.constant 0 : i32
    %c0_i32_1 = arith.constant 0 : i32
    %c0_i32_2 = arith.constant 0 : i32
    return %c0_i32, %c0_i32_0, %c0_i32_1 : i32, i32, i32
  }
  func.func @transform_7(%arg0: i32, %arg1: memref<3xi32, #tpu.memory_space<smem>>, %arg2: memref<3x48xi32, #tpu.memory_space<smem>>, %arg3: memref<3x48xi32, #tpu.memory_space<smem>>) -> (i32, i32) {
    %c0_i32 = arith.constant 0 : i32
    %c0_i32_0 = arith.constant 0 : i32
    %c0_i32_1 = arith.constant 0 : i32
    return %c0_i32, %c0_i32_0 : i32, i32
  }
  func.func @transform_8(%arg0: i32, %arg1: memref<3xi32, #tpu.memory_space<smem>>, %arg2: memref<3x48xi32, #tpu.memory_space<smem>>, %arg3: memref<3x48xi32, #tpu.memory_space<smem>>) -> (i32, i32, i32) {
    %c0_i32 = arith.constant 0 : i32
    %c0_i32_0 = arith.constant 0 : i32
    %c0_i32_1 = arith.constant 0 : i32
    %c0_i32_2 = arith.constant 0 : i32
    return %c0_i32, %c0_i32_0, %c0_i32_1 : i32, i32, i32
  }
  func.func @transform_9(%arg0: i32, %arg1: memref<3xi32, #tpu.memory_space<smem>>, %arg2: memref<3x48xi32, #tpu.memory_space<smem>>, %arg3: memref<3x48xi32, #tpu.memory_space<smem>>) -> (i32, i32) {
    %c0_i32 = arith.constant 0 : i32
    %c0_i32_0 = arith.constant 0 : i32
    %c0_i32_1 = arith.constant 0 : i32
    return %c0_i32, %c0_i32_0 : i32, i32
  }
  func.func @transform_10(%arg0: i32, %arg1: memref<3xi32, #tpu.memory_space<smem>>, %arg2: memref<3x48xi32, #tpu.memory_space<smem>>, %arg3: memref<3x48xi32, #tpu.memory_space<smem>>) -> (i32, i32) {
    %c0_i32 = arith.constant 0 : i32
    %c0_i32_0 = arith.constant 0 : i32
    %c0_i32_1 = arith.constant 0 : i32
    return %c0_i32, %c0_i32_0 : i32, i32
  }
  func.func @transform_11(%arg0: i32, %arg1: memref<3xi32, #tpu.memory_space<smem>>, %arg2: memref<3x48xi32, #tpu.memory_space<smem>>, %arg3: memref<3x48xi32, #tpu.memory_space<smem>>) -> (i32, i32) {
    %c0_i32 = arith.constant 0 : i32
    %c0_i32_0 = arith.constant 0 : i32
    %c0_i32_1 = arith.constant 0 : i32
    return %c0_i32, %c0_i32_0 : i32, i32
  }
  func.func @transform_12(%arg0: i32, %arg1: memref<3xi32, #tpu.memory_space<smem>>, %arg2: memref<3x48xi32, #tpu.memory_space<smem>>, %arg3: memref<3x48xi32, #tpu.memory_space<smem>>) -> (i32, i32) {
    %c0_i32 = arith.constant 0 : i32
    %c0_i32_0 = arith.constant 0 : i32
    %c0_i32_1 = arith.constant 0 : i32
    return %c0_i32, %c0_i32_0 : i32, i32
  }
  func.func @transform_13(%arg0: i32, %arg1: memref<3xi32, #tpu.memory_space<smem>>, %arg2: memref<3x48xi32, #tpu.memory_space<smem>>, %arg3: memref<3x48xi32, #tpu.memory_space<smem>>) -> (i32, i32) {
    %c0_i32 = arith.constant 0 : i32
    %c0_i32_0 = arith.constant 0 : i32
    %c0_i32_1 = arith.constant 0 : i32
    return %c0_i32, %c0_i32_0 : i32, i32
  }
  func.func @transform_14(%arg0: i32, %arg1: memref<3xi32, #tpu.memory_space<smem>>, %arg2: memref<3x48xi32, #tpu.memory_space<smem>>, %arg3: memref<3x48xi32, #tpu.memory_space<smem>>) -> (i32, i32) {
    %c0_i32 = arith.constant 0 : i32
    %c0_i32_0 = arith.constant 0 : i32
    %c0_i32_1 = arith.constant 0 : i32
    return %c0_i32, %c0_i32_0 : i32, i32
  }
  func.func @transform_15(%arg0: i32, %arg1: memref<3xi32, #tpu.memory_space<smem>>, %arg2: memref<3x48xi32, #tpu.memory_space<smem>>, %arg3: memref<3x48xi32, #tpu.memory_space<smem>>) -> (i32, i32) {
    %c0_i32 = arith.constant 0 : i32
    %c0_i32_0 = arith.constant 0 : i32
    %c0_i32_1 = arith.constant 0 : i32
    return %c0_i32, %c0_i32_0 : i32, i32
  }
}

</mosaic_0001>

<bundles_post_ra>
// kernel: tpu_custom_call.1
= control target key start
LH: loop header
LB: loop body
LE: loop exit
PB: predicated region body
PF: predicated region fallthrough
CT: control target
= control target key end

     0   :  { %s3468_s27 = smov [#allocation9]   ;;  %s3469_s30 = smov [#allocation10]   ;;  %s4119_s0 = inlined_call_operand.hbm [shape: s32[3], index: 0, kind: input, shape index: {}]   ;;  %s4120_s3 = inlined_call_operand.hbm [shape: f32[64,128], index: 3, kind: input, shape index: {}]   ;;  %s4121_s4 = inlined_call_operand.hbm [shape: f32[3,48,128], index: 4, kind: input, shape index: {}]   ;;  %s4122_s5 = inlined_call_operand.hbm [shape: bf16[3,128,128], index: 5, kind: input, shape index: {}]   ;;  %s4123_s6 = inlined_call_operand.hbm [shape: bf16[3,128,128], index: 6, kind: input, shape index: {}]   ;;  %s4124_s7 = inlined_call_operand.hbm [shape: bf16[3,128,128], index: 7, kind: input, shape index: {}]   ;;  %s4125_s8 = inlined_call_operand.vmem [shape: f32[3,1,128], index: 8, kind: input, shape index: {}]   ;;  %s4126_s9 = inlined_call_operand.hbm [shape: bf16[4,128,128], index: 9, kind: input, shape index: {}]   ;;  %s4127_s10 = inlined_call_operand.vmem [shape: f32[1,128], index: 10, kind: input, shape index: {}]   ;;  %s4128_s11 = inlined_call_operand.hbm [shape: bf16[4,128,128], index: 11, kind: input, shape index: {}]   ;;  %s4129_s12 = inlined_call_operand.vmem [shape: f32[1,128], index: 12, kind: input, shape index: {}]   ;;  %s4130_s13 = inlined_call_operand.hbm [shape: bf16[128,128], index: 13, kind: input, shape index: {}]   ;;  %s4131_s14 = inlined_call_operand.vmem [shape: f32[1,128], index: 14, kind: input, shape index: {}]   ;;  %s4132_s15 = inlined_call_operand.vmem [shape: f32[1,128], index: 15, kind: input, shape index: {}]   ;;  %s4133_s16 = inlined_call_operand.vmem [shape: f32[1,128], index: 16, kind: input, shape index: {}]   ;;  %s4134_s17 = inlined_call_operand.vmem [shape: f32[1,128], index: 17, kind: input, shape index: {}]   ;;  %s4135_s18 = inlined_call_operand.hbm [shape: f32[64,128], index: 18, kind: output, shape index: {}]   ;;  %s4136_s1 = inlined_call_operand.hbm [shape: s32[3,48], index: 1, kind: input, shape index: {}]   ;;  %s4137_s2 = inlined_call_operand.hbm [shape: s32[3,48], index: 2, kind: input, shape index: {}]  }
   0x1   :  { %4154 = sst [smem:[#allocation37_spill]] %s4119_s0 }
   0x2   :  { %4155 = sst [smem:[#allocation38_spill]] %s4120_s3  ;;  %s3470_s3 = smov [#allocation11]  }
   0x3   :  { %4156 = sst [smem:[#allocation39_spill]] %s4121_s4 }
   0x4   :  { %4157 = sst [smem:[#allocation40_spill]] %s4123_s6 }
   0x5   :  { %4158 = sst [smem:[#allocation41_spill]] %s4126_s9 }
   0x6   :  { %4159 = sst [smem:[#allocation42_spill]] %s4131_s14 }
   0x7   :  { %4160 = sst [smem:[#allocation43_spill]] %s4132_s15 }
   0x8   :  { %4161 = sst [smem:[#allocation44_spill]] %s4133_s16 }
   0x9   :  { %4162 = sst [smem:[#allocation45_spill]] %s4134_s17 }
   0xa   :  { %4163 = sst [smem:[#allocation46_spill]] %s4135_s18 }
   0xb   :  { %s4164_s14 = sld [smem:[#allocation37_spill]] }
  0x11   :  { %24 = dma.hbm_to_smem %s4164_s14, 16, %s3468_s27, [#allocation8] }
  0x12   :  { %26 = dma.hbm_to_smem %s4136_s1, 64, %s3469_s30, [#allocation8] }
  0x13   :  { %28 = dma.hbm_to_smem %s4137_s2, 64, %s3470_s3, [#allocation8] }
  0x14   :  { %3418 = dma.done.wait [#allocation8], 144 }
  0x15   :  { %3419 = vsyncadd [#allocation8], 4294967152 }
  0x16   :  { %30 = sfence }
  0x17   :  { %31 = vsyncpa [#allocation13], 0 }
  0x18   :  { %32 = vsyncpa [#allocation16], 0 }
  0x19   :  { %34 = vsyncpa [#allocation16 + $0x1], 0 }
  0x1a   :  { %35 = vsyncpa [#allocation19], 0 }
  0x1b   :  { %37 = vsyncpa [#allocation19 + $0x1], 0 }
  0x1c   :  { %38 = vsyncpa [#allocation22], 0 }
  0x1d   :  { %39 = vsyncpa [#allocation25], 0 }
  0x1e   :  { %40 = vsyncpa [#allocation14], 0  ;;  %s3592_s14 = smov 0   ;;  %s3594_s22 = smov 0  }
  0x1f   :  { %s3596_s1 = smov 0   ;;  %s3598_s4 = smov 0  }
  0x20 LB: > { %4165 = sst [smem:[#allocation34_spill]] %s3454_s1  ;;  %s3611_s2 = sadd.s32 4294967295, %s3458_s4   ;;  %s3458_s4 = sphi %s3598_s4, %s4200_s4   ;;  %s3454_s1 = sphi %s3596_s1, %s4202_s1   ;;  %s3450_s22 = sphi %s3594_s22, %s4204_s22   ;;  %s3446_s14 = sphi %s3592_s14, %s4203_s14  }
  0x21   : > { %p87_p0 = scmp.ne.s32.totalorder %s3450_s22, %s3446_s14  ;;  %p4146_p1 = scmp.eq.s32.totalorder %s3611_s2, 0 }
  0x22   : > { %p2407_p2 = scmp.ge.s32.totalorder %s3458_s4, 1  ;;  %p412_p3 = scmp.lt.s32.totalorder %s3458_s4, 4 }
  0x23   : > { %p3620_p5 = por %p4146_p1, %p87_p0  ;;  %s3471_s25 = smov [#allocation21]  }
  0x24   : > { %p3624_p6 = pnand %p2407_p2, %p412_p3  ;;  %s437_s26 = sshll.u32 %s3471_s25, 4  ;;  %s438_s26 = int_to_ptr.vmem [resolvable:$true] %s437_s26 }
  0x25   : > { %s4166_s23 = scalar_select %p3620_p5, 1, 0 }
  0x26   : > { %s4167_s24 = scalar_select %p3624_p6, 1, 0 }
  0x27   : > { %p2917_p7 = pneg %p3624_p6  ;;  %s3637_s28 = sadd.s32 1, %s3458_s4  }
  0x28   : > { %4169 = sst [smem:[#allocation35_spill]] %s3637_s28  ;;  %s74_s29 = sadd.s32 1, %s3454_s1 }
  0x29   : > { %p3632_p8 = pnand %p2917_p7, %p4146_p1  ;;  %s71_s30 = ssub.s32 %s3458_s4, %s3637_s28 }
  0x2a   : > { %s3165_s0 = scalar_lea.vmem %s438_s26, 4096  ;;  %p3173_p13 = scmp.lt.s32.totalorder %s438_s26, %s438_s26 }
  0x2b   : > { %s4168_s27 = scalar_select %p3632_p8, 1, 0 }
  0x2c   : > { %p4147_p9 = pneg %p3632_p8  ;;  %p3166_p10 = scmp.ne.s32.totalorder %s438_s26, %s3165_s0 }
  0x2d   : > { %p3174_p0 = scmp.lt.s32.totalorder %s3165_s0, %s3165_s0 }
  0x2e   : > { %p3168_p11 = pnand %p3166_p10, %p4147_p9 }
  0x2f   : > { %p3175_p2 = por %p3174_p0, %p3173_p13 }
  0x30   : > { %p3169_p12 = pneg %p3168_p11 }
  0x32   : > { %p3176_p3 = pnand %p3175_p2, %p3169_p12 }
  0x34   : > { %3179 = shalt.err (!%p3176_p3)
}
  0x35   : > { %s4141_s19 = smov 64   ;;  %s4143_s3 = smov 4  }
  0x36   : > { %s4170_s9 = sld [smem:[#allocation41_spill]]  ;;  %p72_p7 = scmp.eq.s32.totalorder %s71_s30, 0 }
  0x37   : > { %p81_p10 = scmp.ne.s32.totalorder %s3454_s1, %s3450_s22  ;;  %p82_p11 = scmp.eq.s32.totalorder %s3458_s4, 0 }
  0x38   : > { %s3659_s14 = scalar_select %p72_p7, %s3454_s1, %s74_s29  }
  0x39   : > { %p83_p12 = por %p82_p11, %p81_p10  ;;  %p2947_p13 = scmp.lt.s32.totalorder %s3458_s4, 3 }
  0x3a   : > { %4171 = sst [smem:[#allocation36_spill]] %s3659_s14  ;;  %s497_s0 = sand.u32 1, %s3454_s1  }
  0x3b   : > { %s2886_s28 = smul.u32 48, %s497_s0  ;;  %p3664_p0 = pnand %p2947_p13, %p83_p12 }
  0x3c   : > { %2923 = dma.hbm_to_vmem [thread:$0]  (!%p3632_p8), %s4170_s9, 4096, %s438_s26, [#allocation22], %s4141_s19, %s4141_s19, %s4143_s3  }
  0x3d   : > { %s2887_s16 = smul.u32 768, %s3458_s4  ;;  %s3669_s20 = sshll.u32 %s497_s0, 6 }
  0x3e   : > { %s4173_s21 = sld [smem:[#allocation39_spill]]  ;;  %s499_s29 = scalar_lea.vmem [#allocation15], %s2886_s28 }
  0x3f   : > { %s506_s3 = sshll.u32 %s499_s29, 4  ;;  %s3679_s25 = sshll.u32 %s3458_s4, 10  ;;  %s3676_s3 = int_to_ptr.vmem [resolvable:$true] %s506_s3 }
  0x40   : > { %s4174_s9 = sand.u32 1, %s3458_s4   ;;  %p3689_p3 = pneg %p3664_p0 }
  0x41   : > { %s3683_s14 = scalar_lea.sflag [#allocation16], %s4174_s9 }
  0x44   : > { %s3674_s19 = scalar_lea.hbm %s4173_s21, %s2887_s16  ;;  %s3185_s26 = scalar_lea.hbm %s4173_s21, 2304 }
  0x45   : > { %s3180_s1 = scalar_lea.hbm %s3674_s19, 768  ;;  %p3186_p11 = scmp.lt.s32.totalorder %s3674_s19, %s4173_s21 }
  0x46   : > { %p3181_p2 = scmp.ne.s32.totalorder %s3674_s19, %s3180_s1  ;;  %p3187_p12 = scmp.lt.s32.totalorder %s3185_s26, %s3180_s1 }
  0x48   : > { %p3183_p7 = pnand %p3689_p3, %p3181_p2  ;;  %p3188_p13 = por %p3187_p12, %p3186_p11 }
  0x4a   : > { %p3184_p10 = pneg %p3183_p7 }
  0x4c   : > { %p3189_p4 = pnand %p3188_p13, %p3184_p10 }
  0x4e   : > { %3192 = shalt.err (!%p3189_p4)
}
  0x4f   : > { %s3193_s9 = scalar_lea.vmem %s3676_s3, 768  ;;  %s3474_s15 = smov [#allocation15]  }
  0x50   : > { %p3194_p1 = scmp.ne.s32.totalorder %s3676_s3, %s3193_s9  ;;  %s3198_s16 = sshll.u32 %s3474_s15, 4  ;;  %s3199_s16 = int_to_ptr.vmem [resolvable:$false] %s3198_s16 }
  0x51   : > { %s3200_s28 = scalar_lea.vmem %s3199_s16, 1536  ;;  %p3201_p9 = scmp.lt.s32.totalorder %s3676_s3, %s3199_s16 }
  0x52   : > { %p3196_p2 = pnand %p3194_p1, %p3689_p3  ;;  %p3202_p5 = scmp.lt.s32.totalorder %s3200_s28, %s3193_s9 }
  0x54   : > { %p3197_p7 = pneg %p3196_p2  ;;  %p3203_p6 = por %p3202_p5, %p3201_p9 }
  0x56   : > { %p3204_p8 = pnand %p3203_p6, %p3197_p7 }
  0x58   : > { %3207 = shalt.err (!%p3204_p8)
}
  0x59   : > { %s4153_s1 = smov 128   ;;  %s3476_s26 = smov 8  }
  0x5a   : > { %2933 = dma.hbm_to_vmem [thread:$0]  (!%p3664_p0), %s3674_s19, 768, %s3676_s3, %s3683_s14, %s4153_s1, %s4153_s1, %s3476_s26  }
  0x5b   : > { %s4176_s6 = sld [smem:[#allocation40_spill]]  ;;  %s541_s9 = scalar_lea.vmem [#allocation18], %s3669_s20 }
  0x5c   : > { %s548_s16 = sshll.u32 %s541_s9, 4  ;;  %s4177_s28 = sand.u32 1, %s3458_s4   ;;  %s3722_s16 = int_to_ptr.vmem [resolvable:$true] %s548_s16 }
  0x5d   : > { %s3726_s21 = scalar_lea.sflag [#allocation19], %s4177_s28 }
  0x61   : > { %s3719_s29 = scalar_lea.hbm %s4176_s6, %s3679_s25  ;;  %s3213_s15 = scalar_lea.hbm %s4176_s6, 3072 }
  0x62   : > { %s3208_s17 = scalar_lea.hbm %s3719_s29, 1024  ;;  %p3214_p6 = scmp.lt.s32.totalorder %s3719_s29, %s4176_s6 }
  0x63   : > { %p3209_p1 = scmp.ne.s32.totalorder %s3719_s29, %s3208_s17  ;;  %p3215_p8 = scmp.lt.s32.totalorder %s3213_s15, %s3208_s17 }
  0x65   : > { %p3211_p4 = pnand %p3209_p1, %p3689_p3  ;;  %p3216_p9 = por %p3215_p8, %p3214_p6 }
  0x67   : > { %p3212_p5 = pneg %p3211_p4 }
  0x69   : > { %p3217_p10 = pnand %p3216_p9, %p3212_p5 }
  0x6b   : > { %3220 = shalt.err (!%p3217_p10)
}
  0x6c   : > { %s3221_s4 = scalar_lea.vmem %s3722_s16, 1024  ;;  %s3477_s9 = smov [#allocation18]  }
  0x6d   : > { %p3222_p11 = scmp.ne.s32.totalorder %s3722_s16, %s3221_s4  ;;  %s3226_s28 = sshll.u32 %s3477_s9, 4  ;;  %s3227_s28 = int_to_ptr.vmem [resolvable:$false] %s3226_s28 }
  0x6e   : > { %s3228_s19 = scalar_lea.vmem %s3227_s28, 2048  ;;  %p3229_p2 = scmp.lt.s32.totalorder %s3722_s16, %s3227_s28 }
  0x6f   : > { %p3224_p12 = pnand %p3222_p11, %p3689_p3  ;;  %p3230_p7 = scmp.lt.s32.totalorder %s3228_s19, %s3221_s4 }
  0x71   : > { %p3225_p13 = pneg %p3224_p12  ;;  %p3231_p1 = por %p3230_p7, %p3229_p2 }
  0x73   : > { %p3232_p4 = pnand %p3231_p1, %p3225_p13 }
  0x75   : > { %3235 = shalt.err (!%p3232_p4)
}
  0x76   : > { %s4178_s17 = smov 4   ;;  %s4179_s1 = smov 64  }
  0x77   : > { %2939 = dma.hbm_to_vmem [thread:$0]  (!%p3664_p0), %s3719_s29, 1024, %s3722_s16, %s3726_s21, %s4179_s1, %s4179_s1, %s4178_s17  }
  0x78   : > { %s3478_s3 = smov [#allocation12]   ;;  %s3479_s30 = smov [#allocation23]  }
  0x79   : > { %s424_s15 = sshll.u32 %s3478_s3, 4  ;;  %s453_s9 = sshll.u32 %s3479_s30, 4  ;;  %s425_s15 = int_to_ptr.vmem [resolvable:$true] %s424_s15  ;;  %s454_s9 = int_to_ptr.vmem [resolvable:$true] %s453_s9 }
  0x7a   : > { %s3247_s28 = scalar_lea.vmem %s425_s15, 1024  ;;  %p4180_p6 = scmp.ne.s32.totalorder %s4168_s27, 0 }
  0x7b   : > { %p3248_p5 = scmp.ne.s32.totalorder %s425_s15, %s3247_s28  ;;  %p3255_p11 = scmp.lt.s32.totalorder %s425_s15, %s425_s15 }
  0x7c   : > { %p4181_p8 = pneg %p4180_p6  ;;  %p3256_p12 = scmp.lt.s32.totalorder %s3247_s28, %s3247_s28 }
  0x7e   : > { %p3250_p9 = pnand %p3248_p5, %p4181_p8  ;;  %p3257_p13 = por %p3256_p12, %p3255_p11 }
  0x80   : > { %p3251_p10 = pneg %p3250_p9 }
  0x82   : > { %p3258_p2 = pnand %p3257_p13, %p3251_p10 }
  0x84   : > { %3261 = shalt.err (!%p3258_p2)
}
  0x85   : > { %s4182_s29 = smov 128   ;;  %s4183_s19 = sld [smem:[#allocation38_spill]] }
  0x86   : > { %s3273_s3 = scalar_lea.vmem %s454_s9, 4096  ;;  %p4184_p1 = pmov %p4181_p8 }
  0x87   : > { %p3274_p7 = scmp.ne.s32.totalorder %s454_s9, %s3273_s3  ;;  %p3281_p8 = scmp.lt.s32.totalorder %s454_s9, %s454_s9 }
  0x88   : > { %p3282_p9 = scmp.lt.s32.totalorder %s3273_s3, %s3273_s3 }
  0x89   : > { %p3276_p4 = pnand %p3274_p7, %p4184_p1 }
  0x8a   : > { %p3283_p10 = por %p3282_p9, %p3281_p8 }
  0x8b   : > { %2920 = dma.hbm_to_vmem [thread:$0]  (!%p4180_p6), %s4183_s19, 1024, %s425_s15, [#allocation13], %s4182_s29, %s4182_s29, %s3476_s26  }
  0x8c   : > { %p3277_p5 = pneg %p3276_p4 }
  0x8e   : > { %p3284_p11 = pnand %p3283_p10, %p3277_p5 }
  0x90   : > { %3287 = shalt.err (!%p3284_p11)
}
  0x91   : > { %2926 = dma.hbm_to_vmem [thread:$0]  (!%p4180_p6), %s4128_s11, 4096, %s454_s9, [#allocation22], %s4179_s1, %s4179_s1, %s4178_s17  }
  0x92   : > { %s3480_s26 = smov [#allocation24]   ;;  %s3778_s4 = scalar_lea.hbm %s4122_s5, %s3679_s25 }
  0x93   : > { %s469_s15 = sshll.u32 %s3480_s26, 4  ;;  %p4185_p13 = pmov %p4184_p1  ;;  %s470_s15 = int_to_ptr.vmem [resolvable:$true] %s469_s15 }
  0x94   : > { %s3299_s19 = scalar_lea.vmem %s470_s15, 1024  ;;  %p3307_p1 = scmp.lt.s32.totalorder %s470_s15, %s470_s15 }
  0x95   : > { %p3300_p12 = scmp.ne.s32.totalorder %s470_s15, %s3299_s19  ;;  %p3308_p4 = scmp.lt.s32.totalorder %s3299_s19, %s3299_s19 }
  0x97   : > { %p3302_p2 = pnand %p3300_p12, %p4185_p13  ;;  %p3309_p5 = por %p3308_p4, %p3307_p1 }
  0x99   : > { %p3303_p7 = pneg %p3302_p2 }
  0x9b   : > { %p3310_p8 = pnand %p3309_p5, %p3303_p7 }
  0x9d   : > { %3313 = shalt.err (!%p3310_p8)
}
  0x9e   : > { %2929 = dma.hbm_to_vmem [thread:$0]  (!%p4180_p6), %s4130_s13, 1024, %s470_s15, [#allocation25], %s4179_s1, %s4179_s1, %s4178_s17  }
  0x9f   : > { %s520_s30 = scalar_lea.vmem [#allocation17], %s3669_s20  ;;  %s3798_s27 = scalar_lea.hbm %s4124_s7, %s3679_s25 }
  0xa0   : > { %s527_s28 = sshll.u32 %s520_s30, 4  ;;  %s3314_s16 = scalar_lea.hbm %s3778_s4, 1024  ;;  %s3792_s28 = int_to_ptr.vmem [resolvable:$true] %s527_s28 }
  0xa1   : > { %p3315_p9 = scmp.ne.s32.totalorder %s3778_s4, %s3314_s16  ;;  %s3319_s3 = scalar_lea.hbm %s4122_s5, 3072 }
  0xa2   : > { %p3320_p6 = scmp.lt.s32.totalorder %s3778_s4, %s4122_s5  ;;  %p3321_p12 = scmp.lt.s32.totalorder %s3319_s3, %s3314_s16 }
  0xa3   : > { %p3317_p10 = pnand %p3315_p9, %p3689_p3 }
  0xa4   : > { %p3322_p13 = por %p3321_p12, %p3320_p6 }
  0xa5   : > { %p3318_p11 = pneg %p3317_p10 }
  0xa7   : > { %p3323_p2 = pnand %p3322_p13, %p3318_p11 }
  0xa9   : > { %3326 = shalt.err (!%p3323_p2)
}
  0xaa   : > { %s3327_s25 = scalar_lea.vmem %s3792_s28, 1024  ;;  %s3481_s30 = smov [#allocation17]  }
  0xab   : > { %p3328_p7 = scmp.ne.s32.totalorder %s3792_s28, %s3327_s25  ;;  %s3332_s26 = sshll.u32 %s3481_s30, 4  ;;  %s3333_s26 = int_to_ptr.vmem [resolvable:$false] %s3332_s26 }
  0xac   : > { %s3334_s29 = scalar_lea.vmem %s3333_s26, 2048  ;;  %p3335_p5 = scmp.lt.s32.totalorder %s3792_s28, %s3333_s26 }
  0xad   : > { %p3330_p1 = pnand %p3328_p7, %p3689_p3  ;;  %p3336_p8 = scmp.lt.s32.totalorder %s3334_s29, %s3327_s25 }
  0xaf   : > { %p3331_p4 = pneg %p3330_p1  ;;  %p3337_p9 = por %p3336_p8, %p3335_p5 }
  0xb1   : > { %p3338_p10 = pnand %p3337_p9, %p3331_p4 }
  0xb3   : > { %3341 = shalt.err (!%p3338_p10)
}
  0xb4   : > { %2936 = dma.hbm_to_vmem [thread:$0]  (!%p3664_p0), %s3778_s4, 1024, %s3792_s28, %s3683_s14, %s4179_s1, %s4179_s1, %s4178_s17  }
  0xb5   : > { %s562_s6 = scalar_lea.vmem [#allocation20], %s3669_s20  ;;  %s3342_s19 = scalar_lea.hbm %s3798_s27, 1024 }
  0xb6   : > { %s569_s16 = sshll.u32 %s562_s6, 4  ;;  %p3343_p11 = scmp.ne.s32.totalorder %s3798_s27, %s3342_s19  ;;  %s570_s16 = int_to_ptr.vmem [resolvable:$true] %s569_s16 }
  0xb7   : > { %s3347_s15 = scalar_lea.hbm %s4124_s7, 3072  ;;  %p3348_p13 = scmp.lt.s32.totalorder %s3798_s27, %s4124_s7 }
  0xb8   : > { %p3345_p6 = pnand %p3343_p11, %p3689_p3  ;;  %p3349_p2 = scmp.lt.s32.totalorder %s3347_s15, %s3342_s19 }
  0xba   : > { %p3346_p12 = pneg %p3345_p6  ;;  %p3350_p7 = por %p3349_p2, %p3348_p13 }
  0xbc   : > { %p3351_p1 = pnand %p3350_p7, %p3346_p12 }
  0xbe   : > { %3354 = shalt.err (!%p3351_p1)
}
  0xbf   : > { %s3355_s14 = scalar_lea.vmem %s570_s16, 1024  ;;  %s3482_s20 = smov [#allocation20]  }
  0xc0   : > { %p3356_p4 = scmp.ne.s32.totalorder %s570_s16, %s3355_s14  ;;  %s3360_s4 = sshll.u32 %s3482_s20, 4  ;;  %s3361_s4 = int_to_ptr.vmem [resolvable:$false] %s3360_s4 }
  0xc1   : > { %s3362_s28 = scalar_lea.vmem %s3361_s4, 2048  ;;  %p3363_p9 = scmp.lt.s32.totalorder %s570_s16, %s3361_s4 }
  0xc2   : > { %p3358_p5 = pnand %p3356_p4, %p3689_p3  ;;  %p3364_p10 = scmp.lt.s32.totalorder %s3362_s28, %s3355_s14 }
  0xc4   : > { %p3359_p8 = pneg %p3358_p5  ;;  %p3365_p11 = por %p3364_p10, %p3363_p9 }
  0xc6   : > { %p3366_p6 = pnand %p3365_p11, %p3359_p8 }
  0xc8   : > { %3369 = shalt.err (!%p3366_p6)
}
  0xc9   : > { %2942 = dma.hbm_to_vmem [thread:$0]  (!%p3664_p0), %s3798_s27, 1024, %s570_s16, %s3726_s21, %s4179_s1, %s4179_s1, %s4178_s17  }
  0xca   : > { %p4186_p3 = scmp.ne.s32.totalorder %s4167_s24, 0 }
  0xcb   : > { %p4187_p12 = scmp.eq.s32.totalorder (!%p4186_p3), %s3611_s2, 0 }
  0xcc   : > { %587 = sbr.rel (%p4186_p3) target bundleno = 1823 (0x71f), region = 80 }
  0xd1   : > { %3421 = dma.done.wait (%p4187_p12), [#allocation13], 1024   ;;  %p4188_p13 = pmov %p4187_p12 }
  0xd2   : > { %s593_s0 = sand.u32 1, %s3611_s2   ;;  %s595_s18 = sand.u32 1, %s3450_s22  }
  0xd3   : > { %3423 = vsyncadd (%p4188_p13), [#allocation13], 4294966272  ;;  %s2888_s26 = smul.u32 48, %s595_s18  ;;  %s594_s29 = scalar_lea.sflag [#allocation16], %s593_s0 }
  0xd4   : > { %p4189_p2 = scmp.ne.s32.totalorder %s4166_s23, 0 }
  0xd5   : > { %s3853_s6 = scalar_lea.vmem [#allocation15], %s2888_s26 }
  0xd6   : > { %3425 = dma.done.wait (%p4189_p2), %s594_s29, 1792  }
  0xd7   : > { %3427 = vsyncadd (%p4189_p2), %s594_s29, 4294965504  ;;  %s2425_s24 = sshll.u32 %s595_s18, 6  ;;  %s612_s17 = scalar_lea.sflag [#allocation19], %s593_s0 }
  0xd8   : > { %s3859_s21 = scalar_lea.vmem [#allocation17], %s2425_s24  ;;  %s3861_s1 = scalar_lea.vmem [#allocation18], %s2425_s24 }
  0xd9   : > { %3429 = dma.done.wait (%p4189_p2), %s612_s17, 2048  }
  0xda   : > { %3431 = vsyncadd (%p4189_p2), %s612_s17, 4294965248  ;;  %s3867_s27 = scalar_lea.vmem [#allocation20], %s2425_s24  ;;  %p4190_p0 = pmov %p4187_p12 }
  0xdc   : > { %3433 = dma.done.wait (%p4190_p0), [#allocation22], 8192   ;;  %p4191_p7 = pmov %p4190_p0 }
  0xdd   : > { %p4192_p1 = pmov %p4190_p0 }
  0xde   : > { %3435 = vsyncadd (%p4191_p7), [#allocation22], 4294959104 }
  0xdf   : > { %3437 = dma.done.wait (%p4192_p1), [#allocation25], 1024   ;;  %p4193_p4 = pmov %p4190_p0 }
  0xe0   : > { %p696_p5 = scmp.lt.s32.totalorder %s3611_s2, 2  ;;  %s3879_s23 = sld [smem:[#allocation9 + %s3611_s2]] }
  0xe1   : > { %3439 = vsyncadd (%p4193_p4), [#allocation25], 4294966272  ;;  %p4194_p8 = scmp.ne.s32.totalorder %s3611_s2, 0 }
  0xe2   : > { %s3882_s16 = scalar_select %p696_p5, %s3611_s2, 2 }
  0xe3   : > { %704 = sbr.rel (%p4194_p8) target bundleno = 476 (0x1dc), region = 116 }
  0xe4   : > { %s698_s3 = scalar_lea.vmem %s4125_s8, %s3882_s16 }
  0xe8   : > { %v3018_v0 = vld [vmem:[#allocation21 + $0x38] sm:$0xff]   ;;  %v3020_v2 = vld [vmem:[#allocation21 + $0x30] sm:$0xff]   ;;  %v3022_v4 = vld [vmem:[#allocation21 + $0x28] sm:$0xff]  }
  0xe9   : > { %v3019_v1 = vld [vmem:[#allocation23 + $0x38] sm:$0xff]   ;;  %2650 = vmatprep.subr.bf16.mxu0 %v3018_v0  ;;  %v3021_v3 = vld [vmem:[#allocation23 + $0x30] sm:$0xff]   ;;  %v3023_v5 = vld [vmem:[#allocation23 + $0x28] sm:$0xff]  }
  0xea   : > { %2674 = vmatprep.subr.bf16.mxu1 %v3019_v1  ;;  %2651 = vmatpush3.bf16.msra.mxu0 %v3018_v0  ;;  %v3024_v6 = vld [vmem:[#allocation21 + $0x20] sm:$0xff]   ;;  %v3026_v8 = vld [vmem:[#allocation21 + $0x18] sm:$0xff]   ;;  %v3028_v10 = vld [vmem:[#allocation21 + $0x10] sm:$0xff]  }
  0xeb   : > { %2675 = vmatpush3.bf16.msra.mxu1 %v3019_v1  ;;  %2652 = vmatprep.subr.bf16.mxu0 %v3020_v2  ;;  %v3025_v7 = vld [vmem:[#allocation23 + $0x20] sm:$0xff]   ;;  %v3027_v9 = vld [vmem:[#allocation23 + $0x18] sm:$0xff]   ;;  %v706_v12 = vld [vmem:[#allocation12 + $0x8] sm:$0xff] }
  0xec   : > { %2676 = vmatprep.subr.bf16.mxu1 %v3021_v3  ;;  %v705_v11 = vld [vmem:[#allocation12] sm:$0xff]  ;;  %v3029_v13 = vld [vmem:[#allocation23 + $0x10] sm:$0xff]   ;;  %v3030_v15 = vld [vmem:[#allocation21 + $0x8] sm:$0xff]  }
  0xed   : > { %v713_v14 = vpack.c.bf16 %v706_v12, %v705_v11  ;;  %v3031_v16 = vld [vmem:[#allocation23 + $0x8] sm:$0xff]   ;;  %v3032_v17 = vld [vmem:[#allocation21] sm:$0xff]   ;;  %v707_v19 = vld [vmem:[#allocation12 + $0x10] sm:$0xff] }
  0xee   : > { %2653 = vmatpush3.bf16.msra.mxu0 %v3020_v2  ;;  %v3033_v18 = vld [vmem:[#allocation23] sm:$0xff]   ;;  %v708_v20 = vld [vmem:[#allocation12 + $0x18] sm:$0xff]  ;;  %v710_v22 = vld [vmem:[#allocation12 + $0x28] sm:$0xff] }
  0xef   : > { %2677 = vmatpush3.bf16.msra.mxu1 %v3021_v3  ;;  %2654 = vmatprep.subr.bf16.mxu0 %v3022_v4  ;;  %v709_v21 = vld [vmem:[#allocation12 + $0x20] sm:$0xff]  ;;  %v714_v23 = vpack.c.bf16 %v708_v20, %v707_v19  ;;  %v711_v25 = vld [vmem:[#allocation12 + $0x30] sm:$0xff]  ;;  %v712_v26 = vld [vmem:[#allocation12 + $0x38] sm:$0xff] }
  0xf0   : > { %2678 = vmatprep.subr.bf16.mxu1 %v3023_v5  ;;  %2666 = vmatprep.mubr.bf16.mxu0 %v713_v14  ;;  %v715_v24 = vpack.c.bf16 %v710_v22, %v709_v21  ;;  %v716_v27 = vpack.c.bf16 %v712_v26, %v711_v25  ;;  %v2432_v28 = vld [vmem:[%s4127_s10] ss:$0 sm:$0xff] }
  0xf1   : > { %2690 = vmatprep.mubr.bf16.mxu1 %v713_v14  ;;  %v2441_v29 = vld [vmem:[%s4129_s12] ss:$0 sm:$0xff] }
  0xf2   : > { %2655 = vmatpush3.bf16.msra.mxu0 %v3022_v4 }
  0xf3   : > { %2679 = vmatpush3.bf16.msra.mxu1 %v3023_v5  ;;  %2656 = vmatprep.subr.bf16.mxu0 %v3024_v6 }
  0xf4   : > { %2680 = vmatprep.subr.bf16.mxu1 %v3025_v7 }
  0xf6   : > { %2657 = vmatpush3.bf16.msra.mxu0 %v3024_v6 }
  0xf7   : > { %2681 = vmatpush3.bf16.msra.mxu1 %v3025_v7  ;;  %2658 = vmatprep.subr.bf16.mxu0 %v3026_v8 }
  0xf8   : > { %2682 = vmatprep.subr.bf16.mxu1 %v3027_v9 }
  0xfa   : > { %2659 = vmatpush3.bf16.msra.mxu0 %v3026_v8 }
  0xfb   : > { %2683 = vmatpush3.bf16.msra.mxu1 %v3027_v9  ;;  %2660 = vmatprep.subr.bf16.mxu0 %v3028_v10 }
  0xfc   : > { %2684 = vmatprep.subr.bf16.mxu1 %v3029_v13 }
  0xfe   : > { %2661 = vmatpush3.bf16.msra.mxu0 %v3028_v10 }
  0xff   : > { %2685 = vmatpush3.bf16.msra.mxu1 %v3029_v13  ;;  %2662 = vmatprep.subr.bf16.mxu0 %v3030_v15 }
 0x100   : > { %2686 = vmatprep.subr.bf16.mxu1 %v3031_v16 }
 0x102   : > { %2663 = vmatpush3.bf16.msra.mxu0 %v3030_v15 }
 0x103   : > { %2687 = vmatpush3.bf16.msra.mxu1 %v3031_v16  ;;  %2664 = vmatprep.subr.bf16.mxu0 %v3032_v17 }
 0x104   : > { %2688 = vmatprep.subr.bf16.mxu1 %v3033_v18 }
 0x106   : > { %2665 = vmatpush3.bf16.msra.mxu0 %v3032_v17 }
 0x107   : > { %2689 = vmatpush3.bf16.msra.mxu1 %v3033_v18 }
 0x109   : > { %2667 = vmatmul.mubr.bf16.vlgmr.msra.gmra.mxu0 %v714_v23 }
 0x10a   : > { %2691 = vmatmul.mubr.bf16.vlgmr.msra.gmra.mxu1 %v714_v23  ;;  %2670 = vmatprep.mubr.bf16.mxu0 %v715_v24 }
 0x10b   : > { %2694 = vmatprep.mubr.bf16.mxu1 %v715_v24 }
 0x111   : > { %2671 = vmatmul.mubr.bf16.gmra.mxu0 %v716_v27 }
 0x112   : > { %2695 = vmatmul.mubr.bf16.gmra.mxu1 %v716_v27 }
 0x1c9   : > { %v2668_v30 = vpop.f32.mrf.mxu0 }
 0x1ca   : > { %v831_v31 = vadd.f32 %v2668_v30, %v2432_v28  ;;  %v2692_v32 = vpop.f32.mrf.mxu1 }
 0x1cb   : > { %v975_v33 = vadd.f32 %v2692_v32, %v2441_v29  ;;  %v822_v34 = vpop.f32.mrf.mxu0 }
 0x1cc   : > { %855 = vst [vmem:[#allocation6 + $0x18] sm:$0xff] %v831_v31  ;;  %v823_v35 = vadd.f32 %v2432_v28, %v822_v34  ;;  %v966_v36 = vpop.f32.mrf.mxu1 }
 0x1cd   : > { %999 = vst [vmem:[#allocation7 + $0x10] sm:$0xff] %v975_v33  ;;  %v967_v37 = vadd.f32 %v2441_v29, %v966_v36  ;;  %v2669_v38 = vpop.f32.mrf.mxu0 }
 0x1ce   : > { %853 = vst [vmem:[#allocation6 + $0x30] sm:$0xff] %v823_v35  ;;  %v834_v39 = vadd.f32 %v2669_v38, %v2432_v28  ;;  %v2693_v40 = vpop.f32.mrf.mxu1 }
 0x1cf   : > { %997 = vst [vmem:[#allocation7] sm:$0xff] %v967_v37  ;;  %v978_v41 = vadd.f32 %v2693_v40, %v2441_v29  ;;  %v825_v42 = vpop.f32.mrf.mxu0 }
 0x1d0   : > { %856 = vst [vmem:[#allocation6 + $0x10] sm:$0xff] %v834_v39  ;;  %v826_v43 = vadd.f32 %v2432_v28, %v825_v42  ;;  %v969_v44 = vpop.f32.mrf.mxu1 }
 0x1d1   : > { %1000 = vst [vmem:[#allocation7 + $0x20] sm:$0xff] %v978_v41  ;;  %v970_v45 = vadd.f32 %v2441_v29, %v969_v44  ;;  %v2672_v46 = vpop.f32.mrf.mxu0 }
 0x1d2   : > { %854 = vst [vmem:[#allocation6] sm:$0xff] %v826_v43  ;;  %v847_v47 = vadd.f32 %v2672_v46, %v2432_v28  ;;  %v2696_v48 = vpop.f32.mrf.mxu1 }
 0x1d3   : > { %998 = vst [vmem:[#allocation7 + $0x18] sm:$0xff] %v970_v45  ;;  %v991_v49 = vadd.f32 %v2696_v48, %v2441_v29  ;;  %v838_v50 = vpop.f32.mrf.mxu0 }
 0x1d4   : > { %859 = vst [vmem:[#allocation6 + $0x28] sm:$0xff] %v847_v47  ;;  %v839_v51 = vadd.f32 %v2432_v28, %v838_v50  ;;  %v982_v52 = vpop.f32.mrf.mxu1 }
 0x1d5   : > { %1003 = vst [vmem:[#allocation7 + $0x30] sm:$0xff] %v991_v49  ;;  %v983_v53 = vadd.f32 %v2441_v29, %v982_v52  ;;  %v2673_v54 = vpop.f32.mrf.mxu0 }
 0x1d6   : > { %857 = vst [vmem:[#allocation6 + $0x8] sm:$0xff] %v839_v51  ;;  %v850_v55 = vadd.f32 %v2673_v54, %v2432_v28  ;;  %v2697_v56 = vpop.f32.mrf.mxu1 }
 0x1d7   : > { %1001 = vst [vmem:[#allocation7 + $0x28] sm:$0xff] %v983_v53  ;;  %v994_v57 = vadd.f32 %v2697_v56, %v2441_v29  ;;  %v841_v58 = vpop.f32.mrf.mxu0 }
 0x1d8   : > { %860 = vst [vmem:[#allocation6 + $0x38] sm:$0xff] %v850_v55  ;;  %v842_v59 = vadd.f32 %v2432_v28, %v841_v58  ;;  %v985_v60 = vpop.f32.mrf.mxu1 }
 0x1d9   : > { %1004 = vst [vmem:[#allocation7 + $0x38] sm:$0xff] %v994_v57  ;;  %v986_v61 = vadd.f32 %v2441_v29, %v985_v60 }
 0x1da   : > { %858 = vst [vmem:[#allocation6 + $0x20] sm:$0xff] %v842_v59 }
 0x1db   : > { %1002 = vst [vmem:[#allocation7 + $0x8] sm:$0xff] %v986_v61 }
 0x1dc PF: > { %v3483_v62 = vmov 0.0   ;;  %p2450_p9 = scmp.le.s32.totalorder %s3879_s23, 0 }
 0x1dd   : > { %1005 = vst [vmem:[#allocation2] sm:$0xff] %v3483_v62  ;;  %1006 = vst [vmem:[#allocation2 + $0x8] sm:$0xff] %v3483_v62  ;;  %s3460_s20 = smov (!%p2450_p9), 0  }
 0x1de   : > { %1007 = vst [vmem:[#allocation2 + $0x10] sm:$0xff] %v3483_v62  ;;  %1008 = vst [vmem:[#allocation2 + $0x18] sm:$0xff] %v3483_v62 }
 0x1df   : > { %1009 = vst [vmem:[#allocation2 + $0x20] sm:$0xff] %v3483_v62  ;;  %1010 = vst [vmem:[#allocation2 + $0x28] sm:$0xff] %v3483_v62 }
 0x1e0   : > { %1011 = vst [vmem:[#allocation3] sm:$0xff] %v3483_v62  ;;  %1012 = vst [vmem:[#allocation3 + $0x8] sm:$0xff] %v3483_v62 }
 0x1e1   : > { %1013 = vst [vmem:[#allocation3 + $0x10] sm:$0xff] %v3483_v62  ;;  %1014 = vst [vmem:[#allocation3 + $0x18] sm:$0xff] %v3483_v62 }
 0x1e2   : > { %1015 = vst [vmem:[#allocation3 + $0x20] sm:$0xff] %v3483_v62  ;;  %1016 = vst [vmem:[#allocation3 + $0x28] sm:$0xff] %v3483_v62  ;;  %2309 = sbr.rel (%p2450_p9) target bundleno = 501 (0x1f5), region = 196 }
 0x1e3   : > { %1017 = vst [vmem:[#allocation5] sm:$0xff] %v3483_v62  ;;  %1018 = vst [vmem:[#allocation5 + $0x8] sm:$0xff] %v3483_v62 }
 0x1e4   : > { %1019 = vst [vmem:[#allocation5 + $0x10] sm:$0xff] %v3483_v62  ;;  %1020 = vst [vmem:[#allocation5 + $0x18] sm:$0xff] %v3483_v62 }
 0x1e5   : > { %1021 = vst [vmem:[#allocation5 + $0x20] sm:$0xff] %v3483_v62  ;;  %1022 = vst [vmem:[#allocation5 + $0x28] sm:$0xff] %v3483_v62 }
 0x1e6   : > { %1023 = vst [vmem:[#allocation5 + $0x30] sm:$0xff] %v3483_v62  ;;  %1024 = vst [vmem:[#allocation5 + $0x38] sm:$0xff] %v3483_v62 }
 0x1e7 LB: >> { %s1031_s4 = sshra.s32 %s3462_s20, 7  ;;  %s1036_s28 = sand.u32 127, %s3462_s20  ;;  %s3462_s20 = sphi %s3460_s20, %s1028_s20  }
 0x1e8   : >> { %s1033_s0 = sadd.s32 %s3611_s2, %s1031_s4  ;;  %s1042_s19 = scalar_lea.vmem [#allocation2], %s3462_s20 }
 0x1e9   : >> { %s2451_s18 = sshll.u32 %s1033_s0, 7  ;;  %s1046_s15 = scalar_lea.vmem [#allocation3], %s3462_s20 }
 0x1ea   : >> { %s1037_s26 = sadd.s32 %s2451_s18, %s1036_s28  ;;  %s1028_s20 = sadd.s32 1, %s3462_s20  }
 0x1eb   : >> { %s1038_s29 = sld [smem:[#allocation10 + %s1037_s26]]  ;;  %p1027_p10 = scmp.ge.s32.totalorder %s1028_s20, %s3879_s23 }
 0x1ec   : >> { %s1039_s24 = sld [smem:[#allocation11 + %s1037_s26]] }
 0x1f0   : > { %1030 = sbr.rel (!%p1027_p10) target bundleno = 487 (0x1e7), region = 202 }
 0x1f1   : >> { %s1040_s17 = scalar_lea.vmem [#allocation12], %s1038_s29 }
 0x1f2   : >> { %v1041_v63 = vld [vmem:[%s1040_s17] sm:$0x1]  ;;  %s1044_s9 = scalar_lea.vmem [#allocation12], %s1039_s24 }
 0x1f3   : >> { %1043 = vst [vmem:[%s1042_s19] sm:$0x1] %v1041_v63  ;;  %v1045_v0 = vld [vmem:[%s1044_s9] sm:$0x1] }
 0x1f4   : >> { %1047 = vst [vmem:[%s1046_s15] sm:$0x1] %v1045_v0 }
 0x1f5 PF: > { %2698 = vmatprep.subr.bf16.mxu0 %v3483_v62  ;;  %2726 = vmatprep.subr.bf16.mxu1 %v3483_v62  ;;  %v3034_v1 = vld [vmem:[%s3861_s1 + $0x38] sm:$0xff]   ;;  %vm3484_vm0 = vmmov 0   ;;  %v3036_v3 = vld [vmem:[%s3861_s1 + $0x30] sm:$0xff]   ;;  %v3038_v5 = vld [vmem:[%s3861_s1 + $0x28] sm:$0xff]  }
 0x1f6   : > { %v3035_v2 = vld [vmem:[%s3859_s21 + $0x38] sm:$0xff]   ;;  %2714 = vmatprep.mubr.msk.bf16.mxu0 %vm3484_vm0, %v3483_v62  ;;  %2742 = vmatprep.mubr.msk.bf16.mxu1 %vm3484_vm0, %v3483_v62  ;;  %v3037_v4 = vld [vmem:[%s3859_s21 + $0x30] sm:$0xff]   ;;  %v3039_v6 = vld [vmem:[%s3859_s21 + $0x28] sm:$0xff]  }
 0x1f7   : > { %2699 = vmatpush3.bf16.msra.mxu0 %v3034_v1  ;;  %2727 = vmatpush3.bf16.msra.mxu1 %v3035_v2  ;;  %v3040_v7 = vld [vmem:[%s3861_s1 + $0x20] sm:$0xff]   ;;  %v3042_v9 = vld [vmem:[%s3861_s1 + $0x18] sm:$0xff]   ;;  %v3044_v11 = vld [vmem:[%s3861_s1 + $0x10] sm:$0xff]  }
 0x1f8   : > { %2700 = vmatprep.subr.bf16.mxu0 %v3483_v62  ;;  %2728 = vmatprep.subr.bf16.mxu1 %v3483_v62  ;;  %v3041_v8 = vld [vmem:[%s3859_s21 + $0x20] sm:$0xff]   ;;  %v3043_v10 = vld [vmem:[%s3859_s21 + $0x18] sm:$0xff]   ;;  %v3045_v12 = vld [vmem:[%s3859_s21 + $0x10] sm:$0xff]  }
 0x1f9   : > { %v3046_v13 = vld [vmem:[%s3861_s1 + $0x8] sm:$0xff]   ;;  %v3048_v15 = vld [vmem:[%s3861_s1] sm:$0xff]   ;;  %v3050_v23 = vld [vmem:[%s3867_s27 + $0x38] sm:$0xff]  }
 0x1fa   : > { %v3047_v14 = vld [vmem:[%s3859_s21 + $0x8] sm:$0xff]   ;;  %v3049_v18 = vld [vmem:[%s3859_s21] sm:$0xff]   ;;  %v1048_v19 = vld [vmem:[#allocation2] sm:$0xff] }
 0x1fb   : > { %2701 = vmatpush3.bf16.msra.mxu0 %v3036_v3  ;;  %2729 = vmatpush3.bf16.msra.mxu1 %v3037_v4  ;;  %v1073_v16 = vld [vmem:[#allocation3] sm:$0xff]  ;;  %v1074_v17 = vld [vmem:[#allocation3 + $0x8] sm:$0xff]  ;;  %v1049_v20 = vld [vmem:[#allocation2 + $0x8] sm:$0xff] }
 0x1fc   : > { %2702 = vmatprep.subr.bf16.mxu0 %v3483_v62  ;;  %2730 = vmatprep.subr.bf16.mxu1 %v3483_v62  ;;  %v1079_v21 = vpack.c.bf16 %v1074_v17, %v1073_v16  ;;  %v1054_v22 = vpack.c.bf16 %v1049_v20, %v1048_v19  ;;  %v1075_v24 = vld [vmem:[#allocation3 + $0x10] sm:$0xff]  ;;  %v1076_v25 = vld [vmem:[#allocation3 + $0x18] sm:$0xff]  ;;  %v1050_v26 = vld [vmem:[#allocation2 + $0x10] sm:$0xff] }
 0x1fd   : > { %v1051_v27 = vld [vmem:[#allocation2 + $0x18] sm:$0xff]  ;;  %v3051_v28 = vld [vmem:[%s3867_s27 + $0x30] sm:$0xff]   ;;  %v1080_v29 = vpack.c.bf16 %v1076_v25, %v1075_v24  ;;  %v1077_v32 = vld [vmem:[#allocation3 + $0x20] sm:$0xff] }
 0x1fe   : > { %v1055_v30 = vpack.c.bf16 %v1051_v27, %v1050_v26  ;;  %v3052_v31 = vld [vmem:[%s3867_s27 + $0x28] sm:$0xff]   ;;  %v1052_v34 = vld [vmem:[#allocation2 + $0x20] sm:$0xff]  ;;  %v1053_v35 = vld [vmem:[#allocation2 + $0x28] sm:$0xff] }
 0x1ff   : > { %2703 = vmatpush3.bf16.msra.mxu0 %v3038_v5  ;;  %2731 = vmatpush3.bf16.msra.mxu1 %v3039_v6  ;;  %v1078_v33 = vld [vmem:[#allocation3 + $0x28] sm:$0xff]  ;;  %v3053_v36 = vld [vmem:[%s3867_s27 + $0x20] sm:$0xff]   ;;  %v1056_v38 = vpack.c.bf16 %v1053_v35, %v1052_v34  ;;  %v3054_v39 = vld [vmem:[%s3867_s27 + $0x18] sm:$0xff]  }
 0x200   : > { %2704 = vmatprep.subr.bf16.mxu0 %v3483_v62  ;;  %2732 = vmatprep.subr.bf16.mxu1 %v3483_v62  ;;  %v1081_v37 = vpack.c.bf16 %v1078_v33, %v1077_v32  ;;  %v3055_v40 = vld [vmem:[%s3867_s27 + $0x10] sm:$0xff]   ;;  %v3056_v41 = vld [vmem:[%s3867_s27 + $0x8] sm:$0xff]   ;;  %v3057_v42 = vld [vmem:[%s3867_s27] sm:$0xff]  }
 0x201   : > { %v1308_v47 = vld [vmem:[%s3853_s6] sm:$0xff]  ;;  %v1309_v51 = vld [vmem:[%s3853_s6 + $0x8] sm:$0xff]  ;;  %v1310_v0 = vld [vmem:[%s3853_s6 + $0x10] sm:$0xff] }
 0x202   : > { %v1311_v5 = vld [vmem:[%s3853_s6 + $0x18] sm:$0xff]  ;;  %v1312_v17 = vld [vmem:[%s3853_s6 + $0x20] sm:$0xff] }
 0x203   : > { %2705 = vmatpush3.bf16.msra.mxu0 %v3040_v7  ;;  %2733 = vmatpush3.bf16.msra.mxu1 %v3041_v8 }
 0x204   : > { %2706 = vmatprep.subr.bf16.mxu0 %v3483_v62  ;;  %2734 = vmatprep.subr.bf16.mxu1 %v3483_v62 }
 0x207   : > { %2707 = vmatpush3.bf16.msra.mxu0 %v3042_v9  ;;  %2735 = vmatpush3.bf16.msra.mxu1 %v3043_v10 }
 0x208   : > { %2708 = vmatprep.subr.bf16.mxu0 %v3483_v62  ;;  %2736 = vmatprep.subr.bf16.mxu1 %v3483_v62 }
 0x20b   : > { %2709 = vmatpush3.bf16.msra.mxu0 %v3044_v11  ;;  %2737 = vmatpush3.bf16.msra.mxu1 %v3045_v12 }
 0x20c   : > { %2710 = vmatprep.subr.bf16.mxu0 %v3483_v62  ;;  %2738 = vmatprep.subr.bf16.mxu1 %v3483_v62 }
 0x20f   : > { %2711 = vmatpush3.bf16.msra.mxu0 %v3046_v13  ;;  %2739 = vmatpush3.bf16.msra.mxu1 %v3047_v14 }
 0x210   : > { %2712 = vmatprep.subr.bf16.mxu0 %v3483_v62  ;;  %2740 = vmatprep.subr.bf16.mxu1 %v3483_v62 }
 0x213   : > { %2713 = vmatpush3.bf16.msra.mxu0 %v3048_v15  ;;  %2741 = vmatpush3.bf16.msra.mxu1 %v3049_v18 }
 0x214   : > { %2754 = vmatprep.subr.bf16.mxu0 %v3483_v62 }
 0x216   : > { %2715 = vmatmul.mubr.bf16.vlgmr.msra.gmra.mxu0 %v1079_v21  ;;  %2743 = vmatmul.mubr.bf16.vlgmr.msra.gmra.mxu1 %v1054_v22  ;;  %v1313_v22 = vld [vmem:[%s3853_s6 + $0x28] sm:$0xff]  ;;  %s3464_s6 = smov (!%p2450_p9), 0  }
 0x217   : > { %2718 = vmatprep.mubr.msk.bf16.mxu0 %vm3484_vm0, %v3483_v62  ;;  %2746 = vmatprep.mubr.msk.bf16.mxu1 %vm3484_vm0, %v3483_v62 }
 0x218   : > { %2755 = vmatpush3.bf16.msra.mxu0 %v3050_v23 }
 0x219   : > { %2756 = vmatprep.subr.bf16.mxu0 %v3483_v62 }
 0x21c   : > { %2757 = vmatpush3.bf16.msra.mxu0 %v3051_v28 }
 0x21d   : > { %2758 = vmatprep.subr.bf16.mxu0 %v3483_v62 }
 0x21e   : > { %2719 = vmatmul.mubr.bf16.gmra.mxu0 %v1080_v29  ;;  %2747 = vmatmul.mubr.bf16.gmra.mxu1 %v1055_v30 }
 0x21f   : > { %2722 = vmatprep.mubr.msk.bf16.mxu0 %vm3484_vm0, %v3483_v62  ;;  %2750 = vmatprep.mubr.msk.bf16.mxu1 %vm3484_vm0, %v3483_v62 }
 0x220   : > { %2759 = vmatpush3.bf16.msra.mxu0 %v3052_v31  ;;  %v2468_v31 = vld [vmem:[%s698_s3] ss:$0 sm:$0xff] }
 0x221   : > { %2760 = vmatprep.subr.bf16.mxu0 %v3483_v62 }
 0x224   : > { %2761 = vmatpush3.bf16.msra.mxu0 %v3053_v36 }
 0x225   : > { %2762 = vmatprep.subr.bf16.mxu0 %v3483_v62 }
 0x226   : > { %2723 = vmatmul.mubr.bf16.gmra.mxu0 %v1081_v37  ;;  %2751 = vmatmul.mubr.bf16.gmra.mxu1 %v1056_v38 }
 0x227   : > { %2770 = vmatprep.mubr.msk.bf16.mxu0 %vm3484_vm0, %v3483_v62 }
 0x228   : > { %2763 = vmatpush3.bf16.msra.mxu0 %v3054_v39 }
 0x229   : > { %2764 = vmatprep.subr.bf16.mxu0 %v3483_v62 }
 0x22c   : > { %2765 = vmatpush3.bf16.msra.mxu0 %v3055_v40 }
 0x22d   : > { %2766 = vmatprep.subr.bf16.mxu0 %v3483_v62 }
 0x230   : > { %2767 = vmatpush3.bf16.msra.mxu0 %v3056_v41 }
 0x231   : > { %2768 = vmatprep.subr.bf16.mxu0 %v3483_v62 }
 0x234   : > { %2769 = vmatpush3.bf16.msra.mxu0 %v3057_v42 }
 0x2d6   : > { %v1180_v43 = vpop.f32.mrf.mxu0  ;;  %v1285_v44 = vpop.f32.mrf.mxu1 }
 0x2d7   : > { %v1286_v45 = vadd.f32 %v1285_v44, %v1180_v43 }
 0x2d8   : > { %v2716_v46 = vpop.f32.mrf.mxu0  ;;  %v2744_v48 = vpop.f32.mrf.mxu1 }
 0x2d9   : > { %v1314_v52 = vadd.f32 %v1308_v47, %v1286_v45 }
 0x2da   : > { %v1183_v49 = vpop.f32.mrf.mxu0  ;;  %v1288_v50 = vpop.f32.mrf.mxu1 }
 0x2db   : > { %v1289_v53 = vadd.f32 %v1288_v50, %v1183_v49  ;;  %v1320_v59 = vmax.f32 %v1314_v52, 0.0 }
 0x2dc   : > { %v2717_v54 = vpop.f32.mrf.mxu0  ;;  %v2745_v55 = vpop.f32.mrf.mxu1 }
 0x2dd   : > { %v1315_v56 = vadd.f32 %v1309_v51, %v1289_v53 }
 0x2de   : > { %v1188_v57 = vpop.f32.mrf.mxu0  ;;  %v1293_v58 = vpop.f32.mrf.mxu1 }
 0x2df   : > { %v1321_v60 = vmax.f32 %v1315_v56, 0.0  ;;  %v1294_v61 = vadd.f32 %v1293_v58, %v1188_v57 }
 0x2e0   : > { %v2720_v63 = vpop.f32.mrf.mxu0  ;;  %v2748_v1 = vpop.f32.mrf.mxu1 }
 0x2e1   : > { %v1326_v2 = vpack.c.bf16 %v1321_v60, %v1320_v59  ;;  %v1316_v6 = vadd.f32 %v1310_v0, %v1294_v61 }
 0x2e2   : > { %v1191_v3 = vpop.f32.mrf.mxu0  ;;  %v1296_v4 = vpop.f32.mrf.mxu1 }
 0x2e3   : > { %v1297_v7 = vadd.f32 %v1296_v4, %v1191_v3  ;;  %2771 = vmatmul.mubr.bf16.vlgmr.msra.gmra.mxu0 %v1326_v2  ;;  %v1322_v13 = vmax.f32 %v1316_v6, 0.0 }
 0x2e4   : > { %v2721_v8 = vpop.f32.mrf.mxu0  ;;  %v2749_v9 = vpop.f32.mrf.mxu1  ;;  %2774 = vmatprep.mubr.msk.bf16.mxu0 %vm3484_vm0, %v3483_v62 }
 0x2e5   : > { %v1317_v10 = vadd.f32 %v1311_v5, %v1297_v7 }
 0x2e6   : > { %v1196_v11 = vpop.f32.mrf.mxu0  ;;  %v1301_v12 = vpop.f32.mrf.mxu1 }
 0x2e7   : > { %v1323_v14 = vmax.f32 %v1317_v10, 0.0  ;;  %v1302_v15 = vadd.f32 %v1301_v12, %v1196_v11 }
 0x2e8   : > { %v2724_v16 = vpop.f32.mrf.mxu0  ;;  %v2752_v18 = vpop.f32.mrf.mxu1 }
 0x2e9   : > { %v1327_v20 = vpack.c.bf16 %v1323_v14, %v1322_v13  ;;  %v1318_v23 = vadd.f32 %v1312_v17, %v1302_v15 }
 0x2ea   : > { %v1199_v19 = vpop.f32.mrf.mxu0  ;;  %v1304_v21 = vpop.f32.mrf.mxu1 }
 0x2eb   : > { %v1305_v24 = vadd.f32 %v1304_v21, %v1199_v19  ;;  %2775 = vmatmul.mubr.bf16.gmra.mxu0 %v1327_v20  ;;  %v1324_v28 = vmax.f32 %v1318_v23, 0.0 }
 0x2ec   : > { %v2725_v25 = vpop.f32.mrf.mxu0  ;;  %v2753_v26 = vpop.f32.mrf.mxu1  ;;  %2778 = vmatprep.mubr.msk.bf16.mxu0 %vm3484_vm0, %v3483_v62 }
 0x2ed   : > { %v1319_v27 = vadd.f32 %v1313_v22, %v1305_v24 }
 0x2ef   : > { %v1325_v29 = vmax.f32 %v1319_v27, 0.0 }
 0x2f1   : > { %v1328_v30 = vpack.c.bf16 %v1325_v29, %v1324_v28 }
 0x2f3   : > { %2779 = vmatmul.mubr.bf16.gmra.mxu0 %v1328_v30 }
 0x3a3   : > { %v1434_v32 = vpop.f32.mrf.mxu0 }
 0x3a4   : > { %v1435_v33 = vadd.f32 %v2468_v31, %v1434_v32 }
 0x3a5   : > { %v2772_v34 = vpop.f32.mrf.mxu0 }
 0x3a6   : > { %1457 = vst [vmem:[#allocation4] sm:$0xff] %v1435_v33 }
 0x3a7   : > { %v1437_v35 = vpop.f32.mrf.mxu0 }
 0x3a8   : > { %v1438_v36 = vadd.f32 %v2468_v31, %v1437_v35 }
 0x3a9   : > { %v2773_v37 = vpop.f32.mrf.mxu0 }
 0x3aa   : > { %1458 = vst [vmem:[#allocation4 + $0x8] sm:$0xff] %v1438_v36 }
 0x3ab   : > { %v1442_v38 = vpop.f32.mrf.mxu0 }
 0x3ac   : > { %v1443_v62 = vadd.f32 %v2468_v31, %v1442_v38 }
 0x3ad   : > { %v2776_v39 = vpop.f32.mrf.mxu0 }
 0x3ae   : > { %1459 = vst [vmem:[#allocation4 + $0x10] sm:$0xff] %v1443_v62 }
 0x3af   : > { %v1445_v40 = vpop.f32.mrf.mxu0 }
 0x3b0   : > { %v1446_v41 = vadd.f32 %v2468_v31, %v1445_v40 }
 0x3b1   : > { %v2777_v42 = vpop.f32.mrf.mxu0 }
 0x3b2   : > { %1460 = vst [vmem:[#allocation4 + $0x18] sm:$0xff] %v1446_v41 }
 0x3b3   : > { %v1450_v43 = vpop.f32.mrf.mxu0 }
 0x3b4   : > { %v1451_v44 = vadd.f32 %v2468_v31, %v1450_v43 }
 0x3b5   : > { %v2780_v45 = vpop.f32.mrf.mxu0 }
 0x3b6   : > { %1461 = vst [vmem:[#allocation4 + $0x20] sm:$0xff] %v1451_v44  ;;  %2314 = sbr.rel (%p2450_p9) target bundleno = 970 (0x3ca), region = 207 }
 0x3b7   : > { %v1453_v46 = vpop.f32.mrf.mxu0 }
 0x3b8   : > { %v1454_v47 = vadd.f32 %v2468_v31, %v1453_v46 }
 0x3b9   : > { %v2781_v48 = vpop.f32.mrf.mxu0 }
 0x3ba   : > { %1462 = vst [vmem:[#allocation4 + $0x28] sm:$0xff] %v1454_v47 }
 0x3bb LB: >> { %s1469_s27 = sshra.s32 %s3466_s6, 7  ;;  %s1474_s16 = sand.u32 127, %s3466_s6  ;;  %s3466_s6 = sphi %s3464_s6, %s1466_s6  }
 0x3bc   : >> { %s1471_s3 = sadd.s32 %s3611_s2, %s1469_s27  ;;  %s1479_s20 = scalar_lea.vmem [#allocation4], %s3466_s6 }
 0x3bd   : >> { %s2478_s25 = sshll.u32 %s1471_s3, 7  ;;  %s1466_s6 = sadd.s32 1, %s3466_s6  }
 0x3be   : >> { %s1475_s30 = sadd.s32 %s2478_s25, %s1474_s16  ;;  %p1465_p11 = scmp.ge.s32.totalorder %s1466_s6, %s3879_s23 }
 0x3bf   : >> { %s1476_s14 = sld [smem:[#allocation11 + %s1475_s30]] }
 0x3c1   : >> { %v1480_v49 = vld [vmem:[%s1479_s20] sm:$0x1] }
 0x3c5   : >> { %s1477_s4 = scalar_lea.vmem [#allocation5], %s1476_s14  ;;  %1468 = sbr.rel (!%p1465_p11) target bundleno = 955 (0x3bb), region = 213 }
 0x3c6   : >> { %v1478_v50 = vld [vmem:[%s1477_s4] sm:$0x1] }
 0x3c7   : >> { %v1481_v51 = vadd.f32 %v1480_v49, %v1478_v50 }
 0x3c9   : >> { %1482 = vst [vmem:[%s1477_s4] sm:$0x1] %v1481_v51 }
 0x3ca PF: > { %s2479_s28 = sshll.u32 %s3611_s2, 6  ;;  %v1497_v17 = vld [vmem:[#allocation6 + $0x18] sm:$0xff]  ;;  %v1495_v19 = vld [vmem:[#allocation6 + $0x30] sm:$0xff]  ;;  %v1496_v25 = vld [vmem:[#allocation6] sm:$0xff]  ;;  %p2529_p6 = scmp.ne.s32.totalorder %s3611_s2, 2 }
 0x3cb   : > { %s4003_s0 = scalar_lea.vmem [#allocation21], %s2479_s28  ;;  %s4008_s23 = scalar_lea.vmem [#allocation23], %s2479_s28  ;;  %v1498_v22 = vld [vmem:[#allocation6 + $0x10] sm:$0xff]  ;;  %v1501_v29 = vld [vmem:[#allocation6 + $0x28] sm:$0xff]  ;;  %v1652_v32 = vld [vmem:[#allocation7] sm:$0xff] }
 0x3cc   : > { %v3058_v55 = vld [vmem:[%s4003_s0 + $0x78] sm:$0xff]   ;;  %v3059_v56 = vld [vmem:[%s4003_s0 + $0x70] sm:$0xff]   ;;  %v3060_v57 = vld [vmem:[%s4003_s0 + $0x68] sm:$0xff]   ;;  %s4195_s29 = sld [smem:[#allocation42_spill]] (!%p2529_p6) }
 0x3cd   : > { %2782 = vmatprep.subr.bf16.mxu1 %v3058_v55  ;;  %v3065_v58 = vld [vmem:[%s4008_s23 + $0x78] sm:$0xff]   ;;  %v3061_v59 = vld [vmem:[%s4003_s0 + $0x60] sm:$0xff]   ;;  %v3067_v60 = vld [vmem:[%s4008_s23 + $0x70] sm:$0xff]   ;;  %s4196_s19 = sld [smem:[#allocation45_spill]] (!%p2529_p6) }
 0x3ce   : > { %2783 = vmatpush3.bf16.msra.mxu1 %v3058_v55  ;;  %2806 = vmatprep.subr.bf16.mxu0 %v3065_v58  ;;  %v3068_v61 = vld [vmem:[%s4008_s23 + $0x68] sm:$0xff]   ;;  %v3062_v63 = vld [vmem:[%s4003_s0 + $0x58] sm:$0xff]   ;;  %v3069_v0 = vld [vmem:[%s4008_s23 + $0x60] sm:$0xff]   ;;  %s4197_s21 = sld [smem:[#allocation43_spill]] (!%p2529_p6) }
 0x3cf   : > { %2784 = vmatprep.subr.bf16.mxu1 %v3059_v56  ;;  %2807 = vmatpush3.bf16.msra.mxu0 %v3065_v58  ;;  %v3063_v1 = vld [vmem:[%s4003_s0 + $0x50] sm:$0xff]   ;;  %v3070_v2 = vld [vmem:[%s4008_s23 + $0x58] sm:$0xff]   ;;  %v3064_v3 = vld [vmem:[%s4003_s0 + $0x48] sm:$0xff]   ;;  %s4198_s27 = sld [smem:[#allocation44_spill]] (!%p2529_p6) }
 0x3d0   : > { %v1483_v52 = vld [vmem:[#allocation5] sm:$0xff]  ;;  %v1484_v53 = vld [vmem:[#allocation5 + $0x8] sm:$0xff]  ;;  %2808 = vmatprep.subr.bf16.mxu0 %v3067_v60  ;;  %v3066_v5 = vld [vmem:[%s4003_s0 + $0x40] sm:$0xff]  }
 0x3d1   : > { %v1491_v54 = vpack.c.bf16 %v1484_v53, %v1483_v52  ;;  %v3071_v4 = vld [vmem:[%s4008_s23 + $0x50] sm:$0xff]   ;;  %v1485_v6 = vld [vmem:[#allocation5 + $0x10] sm:$0xff]  ;;  %v1486_v7 = vld [vmem:[#allocation5 + $0x18] sm:$0xff] }
 0x3d2   : > { %2785 = vmatpush3.bf16.msra.mxu1 %v3059_v56  ;;  %v3072_v8 = vld [vmem:[%s4008_s23 + $0x48] sm:$0xff]   ;;  %v1487_v9 = vld [vmem:[#allocation5 + $0x20] sm:$0xff]  ;;  %v1488_v10 = vld [vmem:[#allocation5 + $0x28] sm:$0xff]  ;;  %v1492_v11 = vpack.c.bf16 %v1486_v7, %v1485_v6 }
 0x3d3   : > { %2798 = vmatprep.mubr.bf16.mxu1 %v1491_v54  ;;  %2822 = vmatprep.mubr.bf16.mxu0 %v1491_v54  ;;  %v1493_v12 = vpack.c.bf16 %v1488_v10, %v1487_v9  ;;  %v3073_v13 = vld [vmem:[%s4008_s23 + $0x40] sm:$0xff]   ;;  %v1490_v15 = vld [vmem:[#allocation5 + $0x38] sm:$0xff]  ;;  %v1499_v34 = vld [vmem:[#allocation6 + $0x8] sm:$0xff] }
 0x3d4   : > { %2786 = vmatprep.subr.bf16.mxu1 %v3060_v57  ;;  %2809 = vmatpush3.bf16.msra.mxu0 %v3067_v60  ;;  %v1489_v14 = vld [vmem:[#allocation5 + $0x30] sm:$0xff]  ;;  %v1655_v38 = vld [vmem:[#allocation7 + $0x20] sm:$0xff]  ;;  %v1502_v39 = vld [vmem:[#allocation6 + $0x38] sm:$0xff] }
 0x3d5   : > { %2810 = vmatprep.subr.bf16.mxu0 %v3068_v61  ;;  %v1494_v16 = vpack.c.bf16 %v1490_v15, %v1489_v14  ;;  %v1654_v27 = vld [vmem:[#allocation7 + $0x10] sm:$0xff]  ;;  %v1653_v43 = vld [vmem:[#allocation7 + $0x18] sm:$0xff]  ;;  %v1500_v45 = vld [vmem:[#allocation6 + $0x20] sm:$0xff] }
 0x3d6   : > { %2787 = vmatpush3.bf16.msra.mxu1 %v3060_v57  ;;  %v1658_v52 = vld [vmem:[#allocation7 + $0x30] sm:$0xff]  ;;  %v1656_v54 = vld [vmem:[#allocation7 + $0x28] sm:$0xff]  ;;  %v1659_v57 = vld [vmem:[#allocation7 + $0x38] sm:$0xff] }
 0x3d7   : > { %2788 = vmatprep.subr.bf16.mxu1 %v3061_v59 }
 0x3d8   : > { %2811 = vmatpush3.bf16.msra.mxu0 %v3068_v61 }
 0x3d9   : > { %2812 = vmatprep.subr.bf16.mxu0 %v3069_v0 }
 0x3da   : > { %2789 = vmatpush3.bf16.msra.mxu1 %v3061_v59 }
 0x3db   : > { %2790 = vmatprep.subr.bf16.mxu1 %v3062_v63 }
 0x3dc   : > { %2813 = vmatpush3.bf16.msra.mxu0 %v3069_v0 }
 0x3dd   : > { %2814 = vmatprep.subr.bf16.mxu0 %v3070_v2 }
 0x3de   : > { %2791 = vmatpush3.bf16.msra.mxu1 %v3062_v63 }
 0x3df   : > { %2792 = vmatprep.subr.bf16.mxu1 %v3063_v1 }
 0x3e0   : > { %2815 = vmatpush3.bf16.msra.mxu0 %v3070_v2 }
 0x3e1   : > { %2816 = vmatprep.subr.bf16.mxu0 %v3071_v4 }
 0x3e2   : > { %2793 = vmatpush3.bf16.msra.mxu1 %v3063_v1 }
 0x3e3   : > { %2794 = vmatprep.subr.bf16.mxu1 %v3064_v3 }
 0x3e4   : > { %2817 = vmatpush3.bf16.msra.mxu0 %v3071_v4 }
 0x3e5   : > { %2818 = vmatprep.subr.bf16.mxu0 %v3072_v8 }
 0x3e6   : > { %2795 = vmatpush3.bf16.msra.mxu1 %v3064_v3 }
 0x3e7   : > { %2796 = vmatprep.subr.bf16.mxu1 %v3066_v5 }
 0x3e8   : > { %2819 = vmatpush3.bf16.msra.mxu0 %v3072_v8 }
 0x3e9   : > { %2820 = vmatprep.subr.bf16.mxu0 %v3073_v13 }
 0x3ea   : > { %2797 = vmatpush3.bf16.msra.mxu1 %v3066_v5 }
 0x3eb   : > { %2854 = vmatprep.subr.bf16.mxu1 %v3065_v58 }
 0x3ec   : > { %2821 = vmatpush3.bf16.msra.mxu0 %v3073_v13 }
 0x3ed   : > { %2799 = vmatmul.mubr.bf16.vlgmr.msra.gmra.mxu1 %v1492_v11 }
 0x3ee   : > { %2862 = vmatpush3.bf16.msra.mxu1 %v3065_v58  ;;  %2802 = vmatprep.mubr.bf16.mxu1 %v1493_v12 }
 0x3ef   : > { %2855 = vmatprep.subr.bf16.mxu1 %v3067_v60  ;;  %2823 = vmatmul.mubr.bf16.vlgmr.msra.gmra.mxu0 %v1492_v11 }
 0x3f2   : > { %2863 = vmatpush3.bf16.msra.mxu1 %v3067_v60  ;;  %v1657_v60 = vld [vmem:[#allocation7 + $0x8] sm:$0xff] }
 0x3f3   : > { %2856 = vmatprep.subr.bf16.mxu1 %v3068_v61 }
 0x3f5   : > { %2803 = vmatmul.mubr.bf16.gmra.mxu1 %v1494_v16 }
 0x3f6   : > { %2864 = vmatpush3.bf16.msra.mxu1 %v3068_v61  ;;  %2826 = vmatprep.mubr.bf16.mxu1 %v1493_v12 }
 0x3f7   : > { %2857 = vmatprep.subr.bf16.mxu1 %v3069_v0 }
 0x3fa   : > { %2865 = vmatpush3.bf16.msra.mxu1 %v3069_v0 }
 0x3fb   : > { %2858 = vmatprep.subr.bf16.mxu1 %v3070_v2 }
 0x3fe   : > { %2866 = vmatpush3.bf16.msra.mxu1 %v3070_v2 }
 0x3ff   : > { %2859 = vmatprep.subr.bf16.mxu1 %v3071_v4 }
 0x402   : > { %2867 = vmatpush3.bf16.msra.mxu1 %v3071_v4 }
 0x403   : > { %2860 = vmatprep.subr.bf16.mxu1 %v3072_v8 }
 0x406   : > { %2868 = vmatpush3.bf16.msra.mxu1 %v3072_v8 }
 0x407   : > { %2861 = vmatprep.subr.bf16.mxu1 %v3073_v13 }
 0x40a   : > { %2869 = vmatpush3.bf16.msra.mxu1 %v3073_v13 }
 0x40d   : > { %2827 = vmatmul.mubr.bf16.vlgmr.msra.gmra.mxu1 %v1494_v16 }
 0x4ad   : > { %v2800_v18 = vpop.f32.mrf.mxu1 }
 0x4ae   : > { %v1638_v20 = vadd.f32 %v2800_v18, %v1497_v17 }
 0x4af   : > { %v1605_v21 = vpop.f32.mrf.mxu1  ;;  %v2824_v31 = vpop.f32.mrf.mxu0 }
 0x4b0   : > { %1646 = vst [vmem:[#allocation6 + $0x18] sm:$0xff] %v1638_v20  ;;  %v1636_v23 = vadd.f32 %v1605_v21, %v1495_v19  ;;  %v1793_v35 = vadd.f32 %v2824_v31, %v1654_v27 }
 0x4b1   : > { %v2801_v24 = vpop.f32.mrf.mxu1  ;;  %v1760_v37 = vpop.f32.mrf.mxu0 }
 0x4b2   : > { %1644 = vst [vmem:[#allocation6 + $0x30] sm:$0xff] %v1636_v23  ;;  %v1639_v26 = vadd.f32 %v2801_v24, %v1498_v22  ;;  %1801 = vst [vmem:[#allocation7 + $0x10] sm:$0xff] %v1793_v35  ;;  %v1791_v40 = vadd.f32 %v1760_v37, %v1652_v32 }
 0x4b3   : > { %v1608_v28 = vpop.f32.mrf.mxu1  ;;  %v2825_v42 = vpop.f32.mrf.mxu0 }
 0x4b4   : > { %1647 = vst [vmem:[#allocation6 + $0x10] sm:$0xff] %v1639_v26  ;;  %v1637_v30 = vadd.f32 %v1608_v28, %v1496_v25  ;;  %1799 = vst [vmem:[#allocation7] sm:$0xff] %v1791_v40  ;;  %v1794_v46 = vadd.f32 %v2825_v42, %v1655_v38 }
 0x4b5   : > { %v2804_v33 = vpop.f32.mrf.mxu1  ;;  %v1763_v48 = vpop.f32.mrf.mxu0 }
 0x4b6   : > { %1645 = vst [vmem:[#allocation6] sm:$0xff] %v1637_v30  ;;  %v1642_v36 = vadd.f32 %v2804_v33, %v1501_v29  ;;  %1802 = vst [vmem:[#allocation7 + $0x20] sm:$0xff] %v1794_v46  ;;  %v1792_v50 = vadd.f32 %v1763_v48, %v1653_v43 }
 0x4b7   : > { %v1621_v62 = vpop.f32.mrf.mxu1 }
 0x4b8   : > { %1650 = vst [vmem:[#allocation6 + $0x28] sm:$0xff] %v1642_v36  ;;  %v1640_v41 = vadd.f32 %v1621_v62, %v1499_v34  ;;  %1800 = vst [vmem:[#allocation7 + $0x18] sm:$0xff] %v1792_v50 }
 0x4b9   : > { %v2805_v44 = vpop.f32.mrf.mxu1 }
 0x4ba   : > { %1648 = vst [vmem:[#allocation6 + $0x8] sm:$0xff] %v1640_v41  ;;  %v1643_v47 = vadd.f32 %v2805_v44, %v1502_v39 }
 0x4bb   : > { %v1624_v49 = vpop.f32.mrf.mxu1 }
 0x4bc   : > { %1651 = vst [vmem:[#allocation6 + $0x38] sm:$0xff] %v1643_v47  ;;  %v1641_v51 = vadd.f32 %v1624_v49, %v1500_v45 }
 0x4be   : > { %1649 = vst [vmem:[#allocation6 + $0x20] sm:$0xff] %v1641_v51 }
 0x4cd   : > { %v2828_v53 = vpop.f32.mrf.mxu1 }
 0x4ce   : > { %v1797_v55 = vadd.f32 %v2828_v53, %v1658_v52 }
 0x4cf   : > { %v1776_v56 = vpop.f32.mrf.mxu1 }
 0x4d0   : > { %1805 = vst [vmem:[#allocation7 + $0x30] sm:$0xff] %v1797_v55  ;;  %v1795_v58 = vadd.f32 %v1776_v56, %v1656_v54 }
 0x4d1   : > { %v2829_v59 = vpop.f32.mrf.mxu1 }
 0x4d2   : > { %1803 = vst [vmem:[#allocation7 + $0x28] sm:$0xff] %v1795_v58  ;;  %v1798_v61 = vadd.f32 %v2829_v59, %v1659_v57  ;;  %1810 = sbr.rel (%p2529_p6) target bundleno = 1801 (0x709), region = 134 }
 0x4d3   : > { %v1779_v63 = vpop.f32.mrf.mxu1 }
 0x4d4   : > { %1806 = vst [vmem:[#allocation7 + $0x38] sm:$0xff] %v1798_v61  ;;  %v1796_v0 = vadd.f32 %v1779_v63, %v1657_v60 }
 0x4d6   : > { %1804 = vst [vmem:[#allocation7 + $0x8] sm:$0xff] %v1796_v0 }
 0x4d7   : > { %v3074_v1 = vld [vmem:[#allocation24 + $0x38] sm:$0xff]   ;;  %v3075_v2 = vld [vmem:[#allocation24 + $0x30] sm:$0xff]   ;;  %v3076_v3 = vld [vmem:[#allocation24 + $0x28] sm:$0xff]  }
 0x4d8   : > { %2830 = vmatprep.subr.bf16.mxu0 %v3074_v1  ;;  %2870 = vmatprep.subr.bf16.mxu1 %v3074_v1  ;;  %v3077_v4 = vld [vmem:[#allocation24 + $0x20] sm:$0xff]   ;;  %v1876_v6 = vld [vmem:[#allocation7 + $0x18] sm:$0xff]  ;;  %v3079_v16 = vld [vmem:[#allocation24 + $0x10] sm:$0xff]  }
 0x4d9   : > { %2831 = vmatpush3.bf16.msra.mxu0 %v3074_v1  ;;  %2878 = vmatpush3.bf16.msra.mxu1 %v3074_v1  ;;  %v1875_v5 = vld [vmem:[#allocation7] sm:$0xff]  ;;  %v1879_v7 = vld [vmem:[#allocation7 + $0x28] sm:$0xff]  ;;  %v1884_v9 = vmax.f32 %v1876_v6, 0.0  ;;  %v3078_v14 = vld [vmem:[#allocation24 + $0x18] sm:$0xff]  }
 0x4da   : > { %2832 = vmatprep.subr.bf16.mxu0 %v3075_v2  ;;  %2871 = vmatprep.subr.bf16.mxu1 %v3075_v2  ;;  %v1883_v8 = vmax.f32 %v1875_v5, 0.0  ;;  %v1887_v11 = vmax.f32 %v1879_v7, 0.0  ;;  %v3080_v17 = vld [vmem:[#allocation24 + $0x8] sm:$0xff]   ;;  %v1877_v18 = vld [vmem:[#allocation7 + $0x10] sm:$0xff]  ;;  %v1878_v19 = vld [vmem:[#allocation7 + $0x20] sm:$0xff] }
 0x4db   : > { %v1881_v20 = vld [vmem:[#allocation7 + $0x30] sm:$0xff]  ;;  %v1882_v21 = vld [vmem:[#allocation7 + $0x38] sm:$0xff]  ;;  %v3081_v22 = vld [vmem:[#allocation24] sm:$0xff]   ;;  %v1885_v23 = vmax.f32 %v1877_v18, 0.0  ;;  %v1886_v24 = vmax.f32 %v1878_v19, 0.0 }
 0x4dc   : > { %v1891_v13 = vpack.c.bf16 %v1884_v9, %v1883_v8  ;;  %v1889_v25 = vmax.f32 %v1881_v20, 0.0  ;;  %v1890_v26 = vmax.f32 %v1882_v21, 0.0  ;;  %v1821_v29 = vld [vmem:[#allocation6 + $0x18] sm:$0xff]  ;;  %v1819_v30 = vld [vmem:[#allocation6 + $0x30] sm:$0xff]  ;;  %v1823_v33 = vld [vmem:[#allocation6 + $0x8] sm:$0xff] }
 0x4dd   : > { %2833 = vmatpush3.bf16.msra.mxu0 %v3075_v2  ;;  %2879 = vmatpush3.bf16.msra.mxu1 %v3075_v2  ;;  %v1880_v10 = vld [vmem:[#allocation7 + $0x8] sm:$0xff]  ;;  %v1892_v27 = vpack.c.bf16 %v1886_v24, %v1885_v23  ;;  %v2532_v31 = vmul.f32 -1.442695, %v1821_v29  ;;  %v1822_v32 = vld [vmem:[#allocation6 + $0x10] sm:$0xff]  ;;  %v2530_v34 = vmul.f32 -1.442695, %v1819_v30 }
 0x4de   : > { %2834 = vmatprep.subr.bf16.mxu0 %v3076_v3  ;;  %2872 = vmatprep.subr.bf16.mxu1 %v3076_v3  ;;  %v1888_v12 = vmax.f32 %v1880_v10, 0.0  ;;  %v1894_v28 = vpack.c.bf16 %v1890_v26, %v1889_v25  ;;  %v2533_v35 = vmul.f32 -1.442695, %v1822_v32  ;;  %v1824_v36 = vld [vmem:[#allocation6 + $0x20] sm:$0xff]  ;;  %v2534_v37 = vmul.f32 -1.442695, %v1823_v33 }
 0x4df   : > { %2846 = vmatprep.mubr.bf16.mxu0 %v1891_v13  ;;  %3082 = vpow2.f32 %v2532_v31  ;;  %v1820_v38 = vld [vmem:[#allocation6] sm:$0xff]  ;;  %v1826_v62 = vld [vmem:[#allocation6 + $0x38] sm:$0xff]  ;;  %v2535_v39 = vmul.f32 -1.442695, %v1824_v36  ;;  %v1825_v41 = vld [vmem:[#allocation6 + $0x28] sm:$0xff] }
 0x4e0   : > { %v1893_v15 = vpack.c.bf16 %v1888_v12, %v1887_v11  ;;  %3084 = vpow2.f32 %v2530_v34  ;;  %v2531_v40 = vmul.f32 -1.442695, %v1820_v38  ;;  %v2537_v42 = vmul.f32 -1.442695, %v1826_v62  ;;  %v2538_v0 = vld [vmem:[%s4195_s29] ss:$0 sm:$0xff] }
 0x4e1   : > { %2835 = vmatpush3.bf16.msra.mxu0 %v3076_v3  ;;  %2880 = vmatpush3.bf16.msra.mxu1 %v3076_v3  ;;  %3086 = vpow2.f32 %v2533_v35  ;;  %v2536_v43 = vmul.f32 -1.442695, %v1825_v41  ;;  %v1813_v3 = vld [vmem:[#allocation12 + $0x10] sm:$0xff]  ;;  %v1811_v9 = vld [vmem:[#allocation12] sm:$0xff]  ;;  %v1816_v30 = vld [vmem:[#allocation12 + $0x28] sm:$0xff] }
 0x4e2   : > { %2836 = vmatprep.subr.bf16.mxu0 %v3077_v4  ;;  %2873 = vmatprep.subr.bf16.mxu1 %v3077_v4  ;;  %3088 = vpow2.f32 %v2534_v37  ;;  %v1815_v20 = vld [vmem:[#allocation12 + $0x20] sm:$0xff]  ;;  %v1812_v38 = vld [vmem:[#allocation12 + $0x8] sm:$0xff] }
 0x4e3   : > { %2850 = vmatprep.mubr.bf16.mxu1 %v1893_v15  ;;  %3090 = vpow2.f32 %v2535_v39  ;;  %v1814_v15 = vld [vmem:[#allocation12 + $0x18] sm:$0xff] }
 0x4e4   : > { %3092 = vpow2.f32 %v2531_v40 }
 0x4e5   : > { %2837 = vmatpush3.bf16.msra.mxu0 %v3077_v4  ;;  %2881 = vmatpush3.bf16.msra.mxu1 %v3077_v4  ;;  %3094 = vpow2.f32 %v2537_v42 }
 0x4e6   : > { %2838 = vmatprep.subr.bf16.mxu0 %v3078_v14  ;;  %2874 = vmatprep.subr.bf16.mxu1 %v3078_v14  ;;  %3096 = vpow2.f32 %v2536_v43 }
 0x4e9   : > { %2839 = vmatpush3.bf16.msra.mxu0 %v3078_v14  ;;  %2882 = vmatpush3.bf16.msra.mxu1 %v3078_v14 }
 0x4ea   : > { %2840 = vmatprep.subr.bf16.mxu0 %v3079_v16  ;;  %2875 = vmatprep.subr.bf16.mxu1 %v3079_v16 }
 0x4ec   : > { %v3083_v44 = vpop.eup %3082 }
 0x4ed   : > { %2841 = vmatpush3.bf16.msra.mxu0 %v3079_v16  ;;  %2883 = vmatpush3.bf16.msra.mxu1 %v3079_v16  ;;  %v3085_v45 = vpop.eup %3084  ;;  %v1853_v47 = vadd.f32 1.0, %v3083_v44 }
 0x4ee   : > { %2842 = vmatprep.subr.bf16.mxu0 %v3080_v17  ;;  %2876 = vmatprep.subr.bf16.mxu1 %v3080_v17  ;;  %v3087_v46 = vpop.eup %3086  ;;  %v1851_v49 = vadd.f32 1.0, %v3085_v45 }
 0x4ef   : > { %v3089_v48 = vpop.eup %3088  ;;  %v1854_v51 = vadd.f32 1.0, %v3087_v46  ;;  %3098 = vrcp.f32 %v1853_v47 }
 0x4f0   : > { %v3091_v50 = vpop.eup %3090  ;;  %v1855_v53 = vadd.f32 1.0, %v3089_v48  ;;  %3100 = vrcp.f32 %v1851_v49  ;;  %v1818_v49 = vld [vmem:[#allocation12 + $0x38] sm:$0xff] }
 0x4f1   : > { %2843 = vmatpush3.bf16.msra.mxu0 %v3080_v17  ;;  %2884 = vmatpush3.bf16.msra.mxu1 %v3080_v17  ;;  %v3093_v52 = vpop.eup %3092  ;;  %v1856_v55 = vadd.f32 1.0, %v3091_v50  ;;  %3102 = vrcp.f32 %v1854_v51 }
 0x4f2   : > { %2844 = vmatprep.subr.bf16.mxu0 %v3081_v22  ;;  %2877 = vmatprep.subr.bf16.mxu1 %v3081_v22  ;;  %v3095_v54 = vpop.eup %3094  ;;  %v1852_v56 = vadd.f32 1.0, %v3093_v52  ;;  %3104 = vrcp.f32 %v1855_v53 }
 0x4f3   : > { %v3097_v57 = vpop.eup %3096  ;;  %v1858_v58 = vadd.f32 1.0, %v3095_v54  ;;  %3106 = vrcp.f32 %v1856_v55 }
 0x4f4   : > { %v1857_v59 = vadd.f32 1.0, %v3097_v57  ;;  %3108 = vrcp.f32 %v1852_v56  ;;  %v1817_v56 = vld [vmem:[#allocation12 + $0x30] sm:$0xff] }
 0x4f5   : > { %2845 = vmatpush3.bf16.msra.mxu0 %v3081_v22  ;;  %2885 = vmatpush3.bf16.msra.mxu1 %v3081_v22  ;;  %3110 = vrcp.f32 %v1858_v58 }
 0x4f6   : > { %3112 = vrcp.f32 %v1857_v59 }
 0x4f8   : > { %2847 = vmatmul.mubr.bf16.vlgmr.msra.gmra.mxu0 %v1892_v27  ;;  %2851 = vmatmul.mubr.bf16.vlgmr.msra.gmra.mxu1 %v1894_v28  ;;  %v4030_v28 = vld [vmem:[%s4196_s19] ss:$0 sm:$0xff] }
 0x4fc   : > { %v3099_v60 = vpop.eup %3098 }
 0x4fd   : > { %v3101_v61 = vpop.eup %3100  ;;  %v2041_v1 = vsub.f32 1.0, %v3099_v60 }
 0x4fe   : > { %v3103_v63 = vpop.eup %3102  ;;  %v2039_v6 = vsub.f32 1.0, %v3101_v61 }
 0x4ff   : > { %v3105_v2 = vpop.eup %3104  ;;  %v2042_v10 = vsub.f32 1.0, %v3103_v63  ;;  %v2049_v14 = vmul.f32 %v2041_v1, %v1813_v3 }
 0x500   : > { %v3107_v7 = vpop.eup %3106  ;;  %v2043_v16 = vsub.f32 1.0, %v3105_v2  ;;  %v2047_v24 = vmul.f32 %v2039_v6, %v1811_v9 }
 0x501   : > { %v3109_v11 = vpop.eup %3108  ;;  %v2044_v25 = vsub.f32 1.0, %v3107_v7  ;;  %v2050_v29 = vmul.f32 %v2042_v10, %v1814_v15 }
 0x502   : > { %v3111_v21 = vpop.eup %3110  ;;  %v2040_v31 = vsub.f32 1.0, %v3109_v11  ;;  %v2051_v37 = vmul.f32 %v2043_v16, %v1815_v20 }
 0x503   : > { %v3113_v32 = vpop.eup %3112  ;;  %v2046_v41 = vsub.f32 1.0, %v3111_v21  ;;  %v2052_v45 = vmul.f32 %v2044_v25, %v1816_v30 }
 0x504   : > { %v2048_v48 = vmul.f32 %v2040_v31, %v1812_v38  ;;  %v2045_v50 = vsub.f32 1.0, %v3113_v32 }
 0x505   : > { %v2054_v59 = vmul.f32 %v2046_v41, %v1818_v49 }
 0x506   : > { %v2053_v1 = vmul.f32 %v2045_v50, %v1817_v56 }
 0x5b8   : > { %v2848_v4 = vpop.f32.mrf.mxu0  ;;  %v2852_v5 = vpop.f32.mrf.mxu1 }
 0x5b9   : > { %v2009_v8 = vadd.f32 %v2848_v4, %v2538_v0  ;;  %v2025_v51 = vadd.f32 %v2852_v5, %v2538_v0 }
 0x5ba   : > { %v2000_v12 = vpop.f32.mrf.mxu0  ;;  %v2016_v13 = vpop.f32.mrf.mxu1 }
 0x5bb   : > { %v2033_v17 = vmul.f32 %v3099_v60, %v2009_v8  ;;  %v2001_v18 = vadd.f32 %v2538_v0, %v2000_v12  ;;  %v2017_v19 = vadd.f32 %v2538_v0, %v2016_v13  ;;  %v2037_v60 = vmul.f32 %v3113_v32, %v2025_v51 }
 0x5bc   : > { %v2849_v22 = vpop.f32.mrf.mxu0  ;;  %v2853_v23 = vpop.f32.mrf.mxu1 }
 0x5bd   : > { %v2031_v26 = vmul.f32 %v3101_v61, %v2001_v18  ;;  %v2012_v27 = vadd.f32 %v2849_v22, %v2538_v0  ;;  %v2035_v33 = vmul.f32 %v3105_v2, %v2017_v19  ;;  %v2057_v36 = vadd.f32 %v2049_v14, %v2033_v17 }
 0x5be   : > { %v2003_v34 = vpop.f32.mrf.mxu0  ;;  %v2019_v35 = vpop.f32.mrf.mxu1  ;;  %v2028_v42 = vadd.f32 %v2853_v23, %v2538_v0  ;;  %v2061_v4 = vadd.f32 %v2053_v1, %v2037_v60 }
 0x5bf   : > { %v2034_v62 = vmul.f32 %v3103_v63, %v2012_v27  ;;  %v2004_v39 = vadd.f32 %v2538_v0, %v2003_v34  ;;  %v2020_v40 = vadd.f32 %v2538_v0, %v2019_v35  ;;  %v2072_v43 = vmul.f32 %v4030_v28, %v2057_v36 }
 0x5c0   : > { %v2055_v44 = vadd.f32 %v2047_v24, %v2031_v26  ;;  %v2059_v54 = vadd.f32 %v2051_v37, %v2035_v33  ;;  %v2038_v57 = vmul.f32 %v3111_v21, %v2028_v42  ;;  %v2076_v6 = vmul.f32 %v4030_v28, %v2061_v4 }
 0x5c1   : > { %v2036_v46 = vmul.f32 %v3107_v7, %v2020_v40  ;;  %v2058_v47 = vadd.f32 %v2050_v29, %v2034_v62  ;;  %v2032_v52 = vmul.f32 %v3109_v11, %v2004_v39  ;;  %2082 = vadd.xlane.f32.xlu1 %v2072_v43 }
 0x5c2   : > { %v2070_v53 = vmul.f32 %v4030_v28, %v2055_v44  ;;  %v2074_v61 = vmul.f32 %v4030_v28, %v2059_v54  ;;  %v2062_v2 = vadd.f32 %v2054_v59, %v2038_v57 }
 0x5c3   : > { %v2073_v55 = vmul.f32 %v4030_v28, %v2058_v47  ;;  %v2060_v58 = vadd.f32 %v2052_v45, %v2036_v46  ;;  %v2056_v63 = vadd.f32 %v2048_v48, %v2032_v52 }
 0x5c4   : > { %2078 = vadd.xlane.f32.xlu0 %v2070_v53  ;;  %v2077_v5 = vmul.f32 %v4030_v28, %v2062_v2 }
 0x5c5   : > { %2084 = vadd.xlane.f32.xlu1 %v2073_v55  ;;  %v2075_v0 = vmul.f32 %v4030_v28, %v2060_v58  ;;  %v2071_v3 = vmul.f32 %v4030_v28, %v2056_v63 }
 0x5c8   : > { %2086 = vadd.xlane.f32.xlu0 %v2074_v61 }
 0x5c9   : > { %2088 = vadd.xlane.f32.xlu1 %v2075_v0 }
 0x5cc   : > { %2080 = vadd.xlane.f32.xlu0 %v2071_v3 }
 0x5cd   : > { %2092 = vadd.xlane.f32.xlu1 %v2077_v5  ;;  %v2548_v5 = vld [vmem:[%s4197_s21] ss:$0 sm:$0xff] }
 0x5d0   : > { %2090 = vadd.xlane.f32.xlu0 %v2076_v6 }
 0x64a   : > { %v2083_v7 = vpop.xlane.xlu1 %2082 }
 0x64b   : > { %v2096_v8 = vmul.f32 0.03125, %v2083_v7 }
 0x64d   : > { %v2079_v9 = vpop.xlane.xlu0 %2078  ;;  %v2104_v10 = vsub.f32 %v2057_v36, %v2096_v8 }
 0x64e   : > { %v2094_v11 = vmul.f32 0.03125, %v2079_v9  ;;  %v2085_v12 = vpop.xlane.xlu1 %2084  ;;  %v2549_v9 = vld [vmem:[%s4198_s27] ss:$0 sm:$0xff] }
 0x64f   : > { %v2097_v14 = vmul.f32 0.03125, %v2085_v12  ;;  %v4041_v15 = vmul.f32 %v4030_v28, %v2104_v10 }
 0x650   : > { %v2102_v13 = vsub.f32 %v2055_v44, %v2094_v11 }
 0x651   : > { %v2087_v16 = vpop.xlane.xlu0 %2086  ;;  %v2105_v17 = vsub.f32 %v2058_v47, %v2097_v14  ;;  %v2120_v19 = vmul.f32 %v4041_v15, %v4041_v15 }
 0x652   : > { %v2098_v18 = vmul.f32 0.03125, %v2087_v16  ;;  %v4046_v20 = vmul.f32 %v4030_v28, %v2102_v13  ;;  %v2089_v21 = vpop.xlane.xlu1 %2088 }
 0x653   : > { %v2099_v23 = vmul.f32 0.03125, %v2089_v21  ;;  %2130 = vadd.xlane.f32.xlu0 %v2120_v19  ;;  %v4049_v24 = vmul.f32 %v4030_v28, %v2105_v17 }
 0x654   : > { %v2106_v22 = vsub.f32 %v2059_v54, %v2098_v18  ;;  %v2118_v29 = vmul.f32 %v4046_v20, %v4046_v20 }
 0x655   : > { %v2081_v25 = vpop.xlane.xlu0 %2080  ;;  %v2121_v27 = vmul.f32 %v4049_v24, %v4049_v24  ;;  %v2107_v32 = vsub.f32 %v2060_v58, %v2099_v23 }
 0x656   : > { %v2095_v26 = vmul.f32 0.03125, %v2081_v25  ;;  %v4056_v30 = vmul.f32 %v4030_v28, %v2106_v22  ;;  %v2093_v31 = vpop.xlane.xlu1 %2092 }
 0x657   : > { %v2101_v34 = vmul.f32 0.03125, %v2093_v31  ;;  %2132 = vadd.xlane.f32.xlu1 %v2121_v27  ;;  %2126 = vadd.xlane.f32.xlu0 %v2118_v29  ;;  %v4066_v41 = vmul.f32 %v4030_v28, %v2107_v32 }
 0x658   : > { %v2103_v33 = vsub.f32 %v2056_v63, %v2095_v26  ;;  %v2122_v37 = vmul.f32 %v4056_v30, %v4056_v30 }
 0x659   : > { %v2091_v35 = vpop.xlane.xlu0 %2090  ;;  %v2109_v62 = vsub.f32 %v2062_v2, %v2101_v34  ;;  %v2123_v43 = vmul.f32 %v4066_v41, %v4066_v41 }
 0x65a   : > { %v2100_v36 = vmul.f32 0.03125, %v2091_v35  ;;  %v4061_v38 = vmul.f32 %v4030_v28, %v2103_v33 }
 0x65b   : > { %2134 = vadd.xlane.f32.xlu0 %v2122_v37  ;;  %v4076_v45 = vmul.f32 %v4030_v28, %v2109_v62 }
 0x65c   : > { %v2108_v39 = vsub.f32 %v2061_v4, %v2100_v36  ;;  %v2119_v40 = vmul.f32 %v4061_v38, %v4061_v38 }
 0x65d   : > { %v2125_v46 = vmul.f32 %v4076_v45, %v4076_v45 }
 0x65e   : > { %2128 = vadd.xlane.f32.xlu1 %v2119_v40  ;;  %v4069_v42 = vmul.f32 %v4030_v28, %v2108_v39 }
 0x660   : > { %v2124_v44 = vmul.f32 %v4069_v42, %v4069_v42 }
 0x662   : > { %2136 = vadd.xlane.f32.xlu1 %v2123_v43  ;;  %2138 = vadd.xlane.f32.xlu0 %v2124_v44 }
 0x666   : > { %2140 = vadd.xlane.f32.xlu1 %v2125_v46 }
 0x6dc   : > { %v2131_v47 = vpop.xlane.xlu0 %2130 }
 0x6dd   : > { %v2144_v48 = vmul.f32 0.03125, %v2131_v47 }
 0x6df   : > { %v2152_v49 = vadd.f32 1e-05, %v2144_v48 }
 0x6e0   : > { %v2133_v50 = vpop.xlane.xlu1 %2132  ;;  %v2127_v51 = vpop.xlane.xlu0 %2126 }
 0x6e1   : > { %3114 = vrsqrt.f32 %v2152_v49  ;;  %v2145_v52 = vmul.f32 0.03125, %v2133_v50  ;;  %v2142_v53 = vmul.f32 0.03125, %v2127_v51 }
 0x6e3   : > { %v2153_v54 = vadd.f32 1e-05, %v2145_v52  ;;  %v2150_v55 = vadd.f32 1e-05, %v2142_v53 }
 0x6e4   : > { %v2135_v56 = vpop.xlane.xlu0 %2134 }
 0x6e5   : > { %3116 = vrsqrt.f32 %v2153_v54  ;;  %v2146_v28 = vmul.f32 0.03125, %v2135_v56 }
 0x6e6   : > { %3118 = vrsqrt.f32 %v2150_v55 }
 0x6e7   : > { %v2129_v57 = vpop.xlane.xlu1 %2128  ;;  %v2154_v58 = vadd.f32 1e-05, %v2146_v28 }
 0x6e8   : > { %v2143_v59 = vmul.f32 0.03125, %v2129_v57 }
 0x6e9   : > { %3120 = vrsqrt.f32 %v2154_v58 }
 0x6ea   : > { %v2151_v60 = vadd.f32 1e-05, %v2143_v59 }
 0x6eb   : > { %v2137_v61 = vpop.xlane.xlu1 %2136  ;;  %v2139_v63 = vpop.xlane.xlu0 %2138 }
 0x6ec   : > { %3122 = vrsqrt.f32 %v2151_v60  ;;  %v2147_v1 = vmul.f32 0.03125, %v2137_v61  ;;  %v2148_v0 = vmul.f32 0.03125, %v2139_v63 }
 0x6ee   : > { %v2155_v2 = vadd.f32 1e-05, %v2147_v1  ;;  %v2156_v3 = vadd.f32 1e-05, %v2148_v0  ;;  %v3115_v4 = vpop.eup %3114 }
 0x6ef   : > { %v2141_v6 = vpop.xlane.xlu1 %2140  ;;  %v2168_v7 = vmul.f32 %v3115_v4, %v4041_v15 }
 0x6f0   : > { %3124 = vrsqrt.f32 %v2155_v2  ;;  %v2149_v8 = vmul.f32 0.03125, %v2141_v6 }
 0x6f1   : > { %3126 = vrsqrt.f32 %v2156_v3  ;;  %v2183_v10 = vmul.f32 %v2548_v5, %v2168_v7 }
 0x6f2   : > { %v2157_v11 = vadd.f32 1e-05, %v2149_v8  ;;  %v3117_v12 = vpop.eup %3116 }
 0x6f3   : > { %v3119_v13 = vpop.eup %3118  ;;  %v2198_v14 = vadd.f32 %v2549_v9, %v2183_v10  ;;  %v2169_v16 = vmul.f32 %v3117_v12, %v4049_v24 }
 0x6f4   : > { %3128 = vrsqrt.f32 %v2157_v11  ;;  %v2166_v17 = vmul.f32 %v3119_v13, %v4046_v20 }
 0x6f5   : > { %2206 = vst [vmem:[#allocation26 + $0x10] sm:$0xff] %v2198_v14  ;;  %v2184_v18 = vmul.f32 %v2548_v5, %v2169_v16 }
 0x6f6   : > { %v3121_v15 = vpop.eup %3120  ;;  %v2181_v19 = vmul.f32 %v2548_v5, %v2166_v17 }
 0x6f7   : > { %v2199_v21 = vadd.f32 %v2549_v9, %v2184_v18  ;;  %v2170_v22 = vmul.f32 %v3121_v15, %v4056_v30 }
 0x6f8   : > { %v2196_v25 = vadd.f32 %v2549_v9, %v2181_v19 }
 0x6f9   : > { %v3123_v23 = vpop.eup %3122  ;;  %2207 = vst [vmem:[#allocation26 + $0x18] sm:$0xff] %v2199_v21  ;;  %v2185_v26 = vmul.f32 %v2548_v5, %v2170_v22 }
 0x6fa   : > { %v2167_v27 = vmul.f32 %v3123_v23, %v4061_v38  ;;  %2204 = vst [vmem:[#allocation26] sm:$0xff] %v2196_v25 }
 0x6fb   : > { %v2200_v29 = vadd.f32 %v2549_v9, %v2185_v26 }
 0x6fc   : > { %v2182_v31 = vmul.f32 %v2548_v5, %v2167_v27 }
 0x6fd   : > { %v3125_v24 = vpop.eup %3124  ;;  %2208 = vst [vmem:[#allocation26 + $0x20] sm:$0xff] %v2200_v29 }
 0x6fe   : > { %v3127_v32 = vpop.eup %3126  ;;  %v2197_v20 = vadd.f32 %v2549_v9, %v2182_v31  ;;  %v2171_v33 = vmul.f32 %v3125_v24, %v4066_v41 }
 0x6ff   : > { %v2172_v34 = vmul.f32 %v3127_v32, %v4069_v42 }
 0x700   : > { %2205 = vst [vmem:[#allocation26 + $0x8] sm:$0xff] %v2197_v20  ;;  %v2186_v35 = vmul.f32 %v2548_v5, %v2171_v33 }
 0x701   : > { %v3129_v30 = vpop.eup %3128  ;;  %v2187_v36 = vmul.f32 %v2548_v5, %v2172_v34 }
 0x702   : > { %v2201_v37 = vadd.f32 %v2549_v9, %v2186_v35  ;;  %v2173_v62 = vmul.f32 %v3129_v30, %v4076_v45 }
 0x703   : > { %v2202_v39 = vadd.f32 %v2549_v9, %v2187_v36 }
 0x704   : > { %2209 = vst [vmem:[#allocation26 + $0x28] sm:$0xff] %v2201_v37  ;;  %v2188_v38 = vmul.f32 %v2548_v5, %v2173_v62 }
 0x705   : > { %2210 = vst [vmem:[#allocation26 + $0x30] sm:$0xff] %v2202_v39 }
 0x706   : > { %v2203_v40 = vadd.f32 %v2549_v9, %v2188_v38 }
 0x708   : > { %2211 = vst [vmem:[#allocation26 + $0x38] sm:$0xff] %v2203_v40 }
 0x709 PF: > { %p2952_p3 = scmp.eq.s32.totalorder %s3611_s2, 2  ;;  %s3485_s16 = smov [#allocation26]  }
 0x70a   : > { %s2218_s3 = sshll.u32 %s3485_s16, 4  ;;  %s2219_s3 = int_to_ptr.vmem [resolvable:$true] %s2218_s3 }
 0x70b   : > { %s3370_s25 = scalar_lea.vmem %s2219_s3, 1024  ;;  %p3377_p0 = scmp.lt.s32.totalorder %s2219_s3, %s2219_s3 }
 0x70c   : > { %p3371_p12 = scmp.ne.s32.totalorder %s2219_s3, %s3370_s25  ;;  %p3378_p7 = scmp.lt.s32.totalorder %s3370_s25, %s3370_s25 }
 0x70e   : > { %p3372_p13 = pnand %p3371_p12, %p2952_p3  ;;  %p3379_p1 = por %p3378_p7, %p3377_p0 }
 0x710   : > { %p3373_p2 = pneg %p3372_p13 }
 0x712   : > { %p3380_p4 = pnand %p3379_p1, %p3373_p2 }
 0x714   : > { %3383 = shalt.err (!%p3380_p4)
}
 0x715   : > { %s3486_s30 = smov 128   ;;  %s3487_s14 = smov 8  }
 0x716   : > { %s4199_s28 = sld [smem:[#allocation46_spill]] }
 0x71c   : > { %2914 = dma.vmem_to_hbm [thread:$0]  (%p2952_p3), %s2219_s3, 1024, %s4199_s28, [#allocation14], %s3486_s30, %s3486_s30, %s3487_s14  }
 0x71d   : > { %3441 = dma.done.wait (%p2952_p3), [#allocation14], 1024  }
 0x71e   : > { %3443 = vsyncadd (%p2952_p3), [#allocation14], 4294966272 }
 0x71f PF: > { %s4200_s4 = sld [smem:[#allocation35_spill]]  ;;  %s4203_s14 = smov %s3450_s22 }
 0x720   : > { %s4201_s0 = sld [smem:[#allocation34_spill]] }
 0x721   : > { %s4202_s1 = sld [smem:[#allocation36_spill]] }
 0x725   : > { %p43_p5 = scmp.ge.s32.totalorder %s4200_s4, 5  }
 0x726   : > { %s4204_s22 = smov %s4201_s0 }
 0x727   :  { %45 = sbr.rel (!%p43_p5) target bundleno = 32 (0x20), region = 224 }
 0x72c   :  { %2234 = vsyncpa [#allocation13], 1 }
 0x72d   :  { %2236 = vsyncpa [#allocation13 + $0x1], 1 }
 0x72e   :  { %2237 = vsyncpa [#allocation16], 1 }
 0x72f   :  { %2239 = vsyncpa [#allocation16 + $0x1], 1 }
 0x730   :  { %2240 = vsyncpa [#allocation19], 1 }
 0x731   :  { %2242 = vsyncpa [#allocation19 + $0x1], 1 }
 0x732   :  { %2243 = vsyncpa [#allocation22], 1 }
 0x733   :  { %2244 = vsyncpa [#allocation25], 1 }
 0x734   :  { %2245 = vsyncpa [#allocation14], 1 }
 0x735   :  { %2247 = vsyncpa [#allocation14 + $0x1], 1 }

</bundles_post_ra>
